<compile_context>
chip_gen: v7x
topology: tpu7x:2x2x1
jax: 0.10.0
libtpu: 0.0.40
codegen_flags: <defaults>
</compile_context>

<pallas_src>
import functools
import math

import jax
import jax.numpy as jnp
from jax.experimental import pallas as pl
from jax.experimental.pallas import tpu as pltpu

OUT_PAD = 128  # lane-dense classifier output width (sliced back to n_classes)


# ----------------------------- helpers -----------------------------

def _gelu_tanh(x):
    # tanh-approx GELU (tanh maps to the EUP).
    # TODO(synk): HF bert-base-cased uses exact erf-GELU; difference ~1e-3 rel.
    return 0.5 * x * (1.0 + jnp.tanh(0.7978845608028654 * (x + 0.044715 * x * x * x)))


def _layernorm(x, g, b, eps=1e-12):
    mu = jnp.mean(x, axis=-1, keepdims=True)
    xc = x - mu
    var = jnp.mean(xc * xc, axis=-1, keepdims=True)
    return xc * jax.lax.rsqrt(var + eps) * g + b


# ----------------------------- fused kernel -----------------------------

def _fused_bert_kernel(
    x_ref, bias_ref,
    emb_ln_g_ref, emb_ln_b_ref,
    wq_ref, wk_ref, wv_ref, bq_ref, bk_ref, bv_ref,
    wo_ref, bo_ref, ln1_g_ref, ln1_b_ref,
    w1_ref, b1_ref, w2_ref, b2_ref, ln2_g_ref, ln2_b_ref,
    pool_w_ref, pool_b_ref, out_w_ref, out_b_ref,
    logits_ref,
    *, num_layers, batch, seq, hidden, num_heads,
):
    dh = hidden // num_heads
    bh = batch * num_heads
    scale = 1.0 / math.sqrt(dh)

    # embedding LayerNorm; activations stay (B, S, H) in vregs/VMEM throughout
    x = _layernorm(x_ref[...].astype(jnp.float32),
                   emb_ln_g_ref[...], emb_ln_b_ref[...])
    # additive key mask, pre-broadcast over heads in the wrapper (hoisted)
    bias = bias_ref[...]                                     # (B*nh, 1, S)

    def tile_over_batch(w):
        # per-head parameter (nh, ...) -> (B*nh, ...): rhs of ONE batched matmul
        # covering every (batch, head) pair.  Broadcast + leading-dim merge only.
        return jnp.broadcast_to(w[None], (batch,) + w.shape).reshape(
            (bh,) + w.shape[1:])

    for l in range(num_layers):     # unrolled; all layer weights VMEM-resident
        # ----- multi-head self-attention: one batched op stream, no head loop -----
        xh = jnp.broadcast_to(x[:, None], (batch, num_heads, seq, hidden))
        xh = xh.reshape(bh, seq, hidden)                     # (B*nh, S, H)

        q = jnp.einsum('bsh,bhd->bsd', xh, tile_over_batch(wq_ref[l]),
                       preferred_element_type=jnp.float32) + tile_over_batch(bq_ref[l])
        k = jnp.einsum('bsh,bhd->bsd', xh, tile_over_batch(wk_ref[l]),
                       preferred_element_type=jnp.float32) + tile_over_batch(bk_ref[l])
        v = jnp.einsum('bsh,bhd->bsd', xh, tile_over_batch(wv_ref[l]),
                       preferred_element_type=jnp.float32) + tile_over_batch(bv_ref[l])

        s = jnp.einsum('bqd,bkd->bqk', q, k,
                       preferred_element_type=jnp.float32) * scale + bias
        m = jnp.max(s, axis=-1, keepdims=True)               # one reduction pass
        p = jnp.exp(s - m)
        p = p * pl.reciprocal(jnp.sum(p, axis=-1, keepdims=True), approx=True)
        ctx = jnp.einsum('bqk,bkd->bqd', p, v,
                         preferred_element_type=jnp.float32)  # (B*nh, S, Dh)

        # head merge folded into the output projection (no concatenate):
        #   concat(heads) @ Wo == sum_h ctx_h @ Wo[h*Dh:(h+1)*Dh, :]
        per_head = jnp.einsum('bsd,bdh->bsh', ctx, tile_over_batch(wo_ref[l]),
                              preferred_element_type=jnp.float32)  # (B*nh, S, H)
        attn_out = jnp.sum(per_head.reshape(batch, num_heads, seq, hidden),
                           axis=1) + bo_ref[l]
        x = _layernorm(x + attn_out, ln1_g_ref[l], ln1_b_ref[l])

        # ----- GELU feed-forward (plain 2D matmuls on the (B*S, H) view) -----
        x2 = x.reshape(batch * seq, hidden)
        ff = jnp.dot(x2, w1_ref[l], preferred_element_type=jnp.float32) + b1_ref[l]
        ff = _gelu_tanh(ff)
        ff = jnp.dot(ff, w2_ref[l], preferred_element_type=jnp.float32) + b2_ref[l]
        x = _layernorm(x + ff.reshape(batch, seq, hidden),
                       ln2_g_ref[l], ln2_b_ref[l])

    # ----- pooler (CLS token) + classifier head -----
    cls = x[:, 0, :]                                         # (B, H), no concat
    pooled = jnp.tanh(
        jnp.dot(cls, pool_w_ref[...], preferred_element_type=jnp.float32)
        + pool_b_ref[...])
    # nn.Dropout(p=0.3) is identity in eval/inference mode.
    # TODO(synk): training-mode dropout RNG mask not reproduced.
    logits = jnp.dot(pooled, out_w_ref[...],
                     preferred_element_type=jnp.float32) + out_b_ref[...]
    logits_ref[...] = logits.astype(logits_ref.dtype)        # lane-dense (B, 128) store


# --------------------------- parameters (synthetic) ---------------------------

def init_params(key, cfg):
    H, I, L = cfg["hidden"], cfg["intermediate"], cfg["num_layers"]
    nh = cfg["num_heads"]
    dh = H // nh
    C = cfg["n_classes"]

    def normal(k, shape):
        return (0.02 * jax.random.normal(k, shape)).astype(jnp.float32)

    keys = iter(jax.random.split(key, 8 + 8 * L))
    params = {
        # linear weights stored as (in, out) = transpose of torch nn.Linear.
        "word_emb": normal(next(keys), (cfg["vocab_size"], H)),
        "pos_emb": normal(next(keys), (cfg["max_position"], H)),
        "type_emb": normal(next(keys), (cfg["type_vocab"], H)),
        "emb_ln_g": jnp.ones((1, H), jnp.float32),
        "emb_ln_b": jnp.zeros((1, H), jnp.float32),
        "pool_w": normal(next(keys), (H, H)),
        "pool_b": jnp.zeros((1, H), jnp.float32),
    }
    out_w = normal(next(keys), (H, C))
    params["out_w"] = jnp.pad(out_w, ((0, 0), (0, OUT_PAD - C)))   # lane-dense head
    params["out_b"] = jnp.zeros((1, OUT_PAD), jnp.float32)

    fields = {k: [] for k in ["wq", "wk", "wv", "bq", "bk", "bv", "wo", "bo",
                              "ln1_g", "ln1_b", "w1", "b1", "w2", "b2",
                              "ln2_g", "ln2_b"]}
    for _ in range(L):
        # Q/K/V weights pre-split per head in the wrapper (layout plumbing done
        # once here, not per layer inside the kernel):
        #   torch-style (in,out)=(H,H)  ->  reshape (H, nh, Dh)  ->  (nh, H, Dh)
        for name in ("wq", "wk", "wv"):
            w = normal(next(keys), (H, H))
            fields[name].append(jnp.transpose(w.reshape(H, nh, dh), (1, 0, 2)))
        for name in ("bq", "bk", "bv"):
            fields[name].append(jnp.zeros((nh, 1, dh), jnp.float32))
        # Wo split per head along its input dim: (H, H) -> (nh, Dh, H)
        wo = normal(next(keys), (H, H))
        fields["wo"].append(wo.reshape(nh, dh, H))
        fields["bo"].append(jnp.zeros((1, H), jnp.float32))
        fields["ln1_g"].append(jnp.ones((1, H), jnp.float32))
        fields["ln1_b"].append(jnp.zeros((1, H), jnp.float32))
        fields["w1"].append(normal(next(keys), (H, I)))
        fields["b1"].append(jnp.zeros((1, I), jnp.float32))
        fields["w2"].append(normal(next(keys), (I, H)))
        fields["b2"].append(jnp.zeros((1, H), jnp.float32))
        fields["ln2_g"].append(jnp.ones((1, H), jnp.float32))
        fields["ln2_b"].append(jnp.zeros((1, H), jnp.float32))
    params["layers"] = {k: jnp.stack(v) for k, v in fields.items()}    # (L, ...)
    return params


# ------------------------------ forward pass ------------------------------

def sentiment_classifier_forward(params, input_ids, attention_mask, cfg):
    B, S = input_ids.shape
    H, nh = cfg["hidden"], cfg["num_heads"]

    # --- embeddings (gather is glue outside the kernel) ---
    x = (params["word_emb"][input_ids]
         + params["pos_emb"][jnp.arange(S)][None, :, :]
         + params["type_emb"][0][None, None, :]).astype(jnp.float32)   # (B, S, H)

    # additive attention-mask bias over key positions, broadcast over heads ONCE
    # here (hoisted out of the kernel's layer loop): (B*nh, 1, S)
    bias = (1.0 - attention_mask.astype(jnp.float32)) * -10000.0
    bias_bh = jnp.broadcast_to(bias[:, None, None, :],
                               (B, nh, 1, S)).reshape(B * nh, 1, S)

    lyr = params["layers"]
    kernel = functools.partial(
        _fused_bert_kernel,
        num_layers=cfg["num_layers"], batch=B, seq=S,
        hidden=H, num_heads=nh)

    vmem = pl.BlockSpec(memory_space=pltpu.MemorySpace.VMEM)
    args = (
        x, bias_bh,
        params["emb_ln_g"], params["emb_ln_b"],
        lyr["wq"], lyr["wk"], lyr["wv"], lyr["bq"], lyr["bk"], lyr["bv"],
        lyr["wo"], lyr["bo"], lyr["ln1_g"], lyr["ln1_b"],
        lyr["w1"], lyr["b1"], lyr["w2"], lyr["b2"], lyr["ln2_g"], lyr["ln2_b"],
        params["pool_w"], params["pool_b"], params["out_w"], params["out_b"],
    )

    # Single fused pallas_call: all weights + activations resident in VMEM
    # (workload is launch-latency-bound at this size; one dispatch total).
    # TODO(synk): at real bert-base scale, switch to a layer grid axis with
    # per-layer bf16 double-buffered BlockSpecs and a 'parallel' batch axis
    # (v7x: 64 MiB VMEM, 2 TensorCores).
    logits_pad = pl.pallas_call(
        kernel,
        out_shape=jax.ShapeDtypeStruct((B, OUT_PAD), jnp.float32),
        in_specs=[vmem] * len(args),
        out_specs=vmem,
        compiler_params=pltpu.CompilerParams(vmem_limit_bytes=32 * 1024 * 1024),
    )(*args)
    return logits_pad[:, :cfg["n_classes"]]


# --------------------------------- main ---------------------------------

if __name__ == "__main__":
    cfg = dict(vocab_size=100, hidden=32, num_heads=2, num_layers=2,
               intermediate=64, max_position=16, type_vocab=2, n_classes=3)

    key = jax.random.PRNGKey(0)
    k_params, k_ids = jax.random.split(key)
    params = init_params(k_params, cfg)

    B, S = 2, 8
    input_ids = jax.random.randint(k_ids, (B, S), 0, cfg["vocab_size"], dtype=jnp.int32)
    attention_mask = jnp.array(
        [[1] * S,
         [1] * (S - 3) + [0] * 3], dtype=jnp.int32)

    fwd = jax.jit(lambda p, ids, mask: sentiment_classifier_forward(p, ids, mask, cfg))
    logits = fwd(params, input_ids, attention_mask)
    logits = jax.block_until_ready(logits)

    assert logits.shape == (B, cfg["n_classes"])
    assert bool(jnp.all(jnp.isfinite(logits)))
    print("KERNEL_OK")
</pallas_src>

<mosaic_0001>
module attributes {stable_mosaic.version = 11 : i64} {
  func.func @_fused_bert_kernel(%arg0: memref<2x8x32xf32, #tpu.memory_space<vmem>>, %arg1: memref<4x1x8xf32, #tpu.memory_space<vmem>>, %arg2: memref<1x32xf32, #tpu.memory_space<vmem>>, %arg3: memref<1x32xf32, #tpu.memory_space<vmem>>, %arg4: memref<2x2x32x16xf32, #tpu.memory_space<vmem>>, %arg5: memref<2x2x32x16xf32, #tpu.memory_space<vmem>>, %arg6: memref<2x2x32x16xf32, #tpu.memory_space<vmem>>, %arg7: memref<2x2x1x16xf32, #tpu.memory_space<vmem>>, %arg8: memref<2x2x1x16xf32, #tpu.memory_space<vmem>>, %arg9: memref<2x2x1x16xf32, #tpu.memory_space<vmem>>, %arg10: memref<2x2x16x32xf32, #tpu.memory_space<vmem>>, %arg11: memref<2x1x32xf32, #tpu.memory_space<vmem>>, %arg12: memref<2x1x32xf32, #tpu.memory_space<vmem>>, %arg13: memref<2x1x32xf32, #tpu.memory_space<vmem>>, %arg14: memref<2x32x64xf32, #tpu.memory_space<vmem>>, %arg15: memref<2x1x64xf32, #tpu.memory_space<vmem>>, %arg16: memref<2x64x32xf32, #tpu.memory_space<vmem>>, %arg17: memref<2x1x32xf32, #tpu.memory_space<vmem>>, %arg18: memref<2x1x32xf32, #tpu.memory_space<vmem>>, %arg19: memref<2x1x32xf32, #tpu.memory_space<vmem>>, %arg20: memref<32x32xf32, #tpu.memory_space<vmem>>, %arg21: memref<1x32xf32, #tpu.memory_space<vmem>>, %arg22: memref<32x128xf32, #tpu.memory_space<vmem>>, %arg23: memref<1x128xf32, #tpu.memory_space<vmem>>, %arg24: memref<2x128xf32, #tpu.memory_space<vmem>>) attributes {dimension_semantics = [], scalar_prefetch = 0 : i64, scratch_operands = 0 : i64, tpu.core_type = #tpu.core_type<tc>} {
    %c0 = arith.constant 0 : index
    %c0_0 = arith.constant 0 : index
    %c0_1 = arith.constant 0 : index
    %0 = vector.load %arg0[%c0, %c0_0, %c0_1] : memref<2x8x32xf32, #tpu.memory_space<vmem>>, vector<2x8x32xf32>
    %c0_2 = arith.constant 0 : index
    %c0_3 = arith.constant 0 : index
    %1 = vector.load %arg2[%c0_2, %c0_3] : memref<1x32xf32, #tpu.memory_space<vmem>>, vector<1x32xf32>
    %c0_4 = arith.constant 0 : index
    %c0_5 = arith.constant 0 : index
    %2 = vector.load %arg3[%c0_4, %c0_5] : memref<1x32xf32, #tpu.memory_space<vmem>>, vector<1x32xf32>
    %cst = arith.constant dense<0.000000e+00> : vector<2x8xf32>
    %3 = vector.multi_reduction <add>, %0, %cst [2] : vector<2x8x32xf32> to vector<2x8xf32>
    %4 = vector.shape_cast %3 : vector<2x8xf32> to vector<2x8x1xf32>
    %cst_6 = arith.constant 3.200000e+01 : f32
    %5 = vector.broadcast %cst_6 : f32 to vector<2x8x1xf32>
    %6 = arith.divf %4, %5 : vector<2x8x1xf32>
    %7 = vector.broadcast %6 : vector<2x8x1xf32> to vector<2x8x32xf32>
    %8 = arith.subf %0, %7 : vector<2x8x32xf32>
    %9 = arith.mulf %8, %8 : vector<2x8x32xf32>
    %cst_7 = arith.constant dense<0.000000e+00> : vector<2x8xf32>
    %10 = vector.multi_reduction <add>, %9, %cst_7 [2] : vector<2x8x32xf32> to vector<2x8xf32>
    %11 = vector.shape_cast %10 : vector<2x8xf32> to vector<2x8x1xf32>
    %cst_8 = arith.constant 3.200000e+01 : f32
    %12 = vector.broadcast %cst_8 : f32 to vector<2x8x1xf32>
    %13 = arith.divf %11, %12 : vector<2x8x1xf32>
    %cst_9 = arith.constant 9.99999996E-13 : f32
    %14 = vector.broadcast %cst_9 : f32 to vector<2x8x1xf32>
    %15 = arith.addf %13, %14 : vector<2x8x1xf32>
    %16 = math.rsqrt %15 : vector<2x8x1xf32>
    %17 = vector.broadcast %16 : vector<2x8x1xf32> to vector<2x8x32xf32>
    %18 = arith.mulf %8, %17 : vector<2x8x32xf32>
    %19 = vector.shape_cast %1 : vector<1x32xf32> to vector<1x1x32xf32>
    %20 = vector.broadcast %19 : vector<1x1x32xf32> to vector<2x8x32xf32>
    %21 = arith.mulf %18, %20 : vector<2x8x32xf32>
    %22 = vector.shape_cast %2 : vector<1x32xf32> to vector<1x1x32xf32>
    %23 = vector.broadcast %22 : vector<1x1x32xf32> to vector<2x8x32xf32>
    %24 = arith.addf %21, %23 : vector<2x8x32xf32>
    %c0_10 = arith.constant 0 : index
    %c0_11 = arith.constant 0 : index
    %c0_12 = arith.constant 0 : index
    %25 = vector.load %arg1[%c0_10, %c0_11, %c0_12] : memref<4x1x8xf32, #tpu.memory_space<vmem>>, vector<4x1x8xf32>
    %26 = vector.shape_cast %24 : vector<2x8x32xf32> to vector<2x1x8x32xf32>
    %27 = vector.shape_cast %26 : vector<2x1x8x32xf32> to vector<2x1x8x32xf32>
    %28 = vector.broadcast %27 : vector<2x1x8x32xf32> to vector<2x2x8x32xf32>
    %29 = vector.shape_cast %28 : vector<2x2x8x32xf32> to vector<4x8x32xf32>
    %c0_13 = arith.constant 0 : index
    %c0_14 = arith.constant 0 : index
    %c0_15 = arith.constant 0 : index
    %c0_16 = arith.constant 0 : index
    %30 = vector.load %arg4[%c0_13, %c0_14, %c0_15, %c0_16] : memref<2x2x32x16xf32, #tpu.memory_space<vmem>>, vector<1x2x32x16xf32>
    %31 = vector.shape_cast %30 : vector<1x2x32x16xf32> to vector<2x32x16xf32>
    %32 = vector.shape_cast %31 : vector<2x32x16xf32> to vector<1x2x32x16xf32>
    %33 = vector.shape_cast %32 : vector<1x2x32x16xf32> to vector<1x2x32x16xf32>
    %34 = vector.broadcast %33 : vector<1x2x32x16xf32> to vector<2x2x32x16xf32>
    %35 = vector.shape_cast %34 : vector<2x2x32x16xf32> to vector<4x32x16xf32>
    "tpu.trace_start"() <{level = 10 : i32, message = "bsh,bhd->bsd"}> : () -> ()
    %cst_17 = arith.constant dense<0.000000e+00> : vector<4x8x16xf32>
    %36 = tpu.matmul %29, %35, %cst_17 {dimension_numbers = #tpu.dot_dimension_numbers<[2], [1], [1], [2], [0, 0, 0, 1, 1, 2], [0], [0]>} : vector<4x8x32xf32>, vector<4x32x16xf32>, vector<4x8x16xf32> -> vector<4x8x16xf32>
    "tpu.trace_stop"() : () -> ()
    %c0_18 = arith.constant 0 : index
    %c0_19 = arith.constant 0 : index
    %c0_20 = arith.constant 0 : index
    %c0_21 = arith.constant 0 : index
    %37 = vector.load %arg7[%c0_18, %c0_19, %c0_20, %c0_21] : memref<2x2x1x16xf32, #tpu.memory_space<vmem>>, vector<1x2x1x16xf32>
    %38 = vector.shape_cast %37 : vector<1x2x1x16xf32> to vector<2x1x16xf32>
    %39 = vector.shape_cast %38 : vector<2x1x16xf32> to vector<1x2x1x16xf32>
    %40 = vector.shape_cast %39 : vector<1x2x1x16xf32> to vector<1x2x1x16xf32>
    %41 = vector.broadcast %40 : vector<1x2x1x16xf32> to vector<2x2x1x16xf32>
    %42 = vector.shape_cast %41 : vector<2x2x1x16xf32> to vector<4x1x16xf32>
    %43 = vector.broadcast %42 : vector<4x1x16xf32> to vector<4x8x16xf32>
    %44 = arith.addf %36, %43 : vector<4x8x16xf32>
    %c0_22 = arith.constant 0 : index
    %c0_23 = arith.constant 0 : index
    %c0_24 = arith.constant 0 : index
    %c0_25 = arith.constant 0 : index
    %45 = vector.load %arg5[%c0_22, %c0_23, %c0_24, %c0_25] : memref<2x2x32x16xf32, #tpu.memory_space<vmem>>, vector<1x2x32x16xf32>
    %46 = vector.shape_cast %45 : vector<1x2x32x16xf32> to vector<2x32x16xf32>
    %47 = vector.shape_cast %46 : vector<2x32x16xf32> to vector<1x2x32x16xf32>
    %48 = vector.shape_cast %47 : vector<1x2x32x16xf32> to vector<1x2x32x16xf32>
    %49 = vector.broadcast %48 : vector<1x2x32x16xf32> to vector<2x2x32x16xf32>
    %50 = vector.shape_cast %49 : vector<2x2x32x16xf32> to vector<4x32x16xf32>
    "tpu.trace_start"() <{level = 10 : i32, message = "bsh,bhd->bsd"}> : () -> ()
    %cst_26 = arith.constant dense<0.000000e+00> : vector<4x8x16xf32>
    %51 = tpu.matmul %29, %50, %cst_26 {dimension_numbers = #tpu.dot_dimension_numbers<[2], [1], [1], [2], [0, 0, 0, 1, 1, 2], [0], [0]>} : vector<4x8x32xf32>, vector<4x32x16xf32>, vector<4x8x16xf32> -> vector<4x8x16xf32>
    "tpu.trace_stop"() : () -> ()
    %c0_27 = arith.constant 0 : index
    %c0_28 = arith.constant 0 : index
    %c0_29 = arith.constant 0 : index
    %c0_30 = arith.constant 0 : index
    %52 = vector.load %arg8[%c0_27, %c0_28, %c0_29, %c0_30] : memref<2x2x1x16xf32, #tpu.memory_space<vmem>>, vector<1x2x1x16xf32>
    %53 = vector.shape_cast %52 : vector<1x2x1x16xf32> to vector<2x1x16xf32>
    %54 = vector.shape_cast %53 : vector<2x1x16xf32> to vector<1x2x1x16xf32>
    %55 = vector.shape_cast %54 : vector<1x2x1x16xf32> to vector<1x2x1x16xf32>
    %56 = vector.broadcast %55 : vector<1x2x1x16xf32> to vector<2x2x1x16xf32>
    %57 = vector.shape_cast %56 : vector<2x2x1x16xf32> to vector<4x1x16xf32>
    %58 = vector.broadcast %57 : vector<4x1x16xf32> to vector<4x8x16xf32>
    %59 = arith.addf %51, %58 : vector<4x8x16xf32>
    %c0_31 = arith.constant 0 : index
    %c0_32 = arith.constant 0 : index
    %c0_33 = arith.constant 0 : index
    %c0_34 = arith.constant 0 : index
    %60 = vector.load %arg6[%c0_31, %c0_32, %c0_33, %c0_34] : memref<2x2x32x16xf32, #tpu.memory_space<vmem>>, vector<1x2x32x16xf32>
    %61 = vector.shape_cast %60 : vector<1x2x32x16xf32> to vector<2x32x16xf32>
    %62 = vector.shape_cast %61 : vector<2x32x16xf32> to vector<1x2x32x16xf32>
    %63 = vector.shape_cast %62 : vector<1x2x32x16xf32> to vector<1x2x32x16xf32>
    %64 = vector.broadcast %63 : vector<1x2x32x16xf32> to vector<2x2x32x16xf32>
    %65 = vector.shape_cast %64 : vector<2x2x32x16xf32> to vector<4x32x16xf32>
    "tpu.trace_start"() <{level = 10 : i32, message = "bsh,bhd->bsd"}> : () -> ()
    %cst_35 = arith.constant dense<0.000000e+00> : vector<4x8x16xf32>
    %66 = tpu.matmul %29, %65, %cst_35 {dimension_numbers = #tpu.dot_dimension_numbers<[2], [1], [1], [2], [0, 0, 0, 1, 1, 2], [0], [0]>} : vector<4x8x32xf32>, vector<4x32x16xf32>, vector<4x8x16xf32> -> vector<4x8x16xf32>
    "tpu.trace_stop"() : () -> ()
    %c0_36 = arith.constant 0 : index
    %c0_37 = arith.constant 0 : index
    %c0_38 = arith.constant 0 : index
    %c0_39 = arith.constant 0 : index
    %67 = vector.load %arg9[%c0_36, %c0_37, %c0_38, %c0_39] : memref<2x2x1x16xf32, #tpu.memory_space<vmem>>, vector<1x2x1x16xf32>
    %68 = vector.shape_cast %67 : vector<1x2x1x16xf32> to vector<2x1x16xf32>
    %69 = vector.shape_cast %68 : vector<2x1x16xf32> to vector<1x2x1x16xf32>
    %70 = vector.shape_cast %69 : vector<1x2x1x16xf32> to vector<1x2x1x16xf32>
    %71 = vector.broadcast %70 : vector<1x2x1x16xf32> to vector<2x2x1x16xf32>
    %72 = vector.shape_cast %71 : vector<2x2x1x16xf32> to vector<4x1x16xf32>
    %73 = vector.broadcast %72 : vector<4x1x16xf32> to vector<4x8x16xf32>
    %74 = arith.addf %66, %73 : vector<4x8x16xf32>
    "tpu.trace_start"() <{level = 10 : i32, message = "bqd,bkd->bqk"}> : () -> ()
    %cst_40 = arith.constant dense<0.000000e+00> : vector<4x8x8xf32>
    %75 = tpu.matmul %44, %59, %cst_40 {dimension_numbers = #tpu.dot_dimension_numbers<[2], [2], [1], [1], [0, 0, 0, 1, 1, 1], [0], [0]>} : vector<4x8x16xf32>, vector<4x8x16xf32>, vector<4x8x8xf32> -> vector<4x8x8xf32>
    "tpu.trace_stop"() : () -> ()
    %cst_41 = arith.constant 2.500000e-01 : f32
    %76 = vector.broadcast %cst_41 : f32 to vector<4x8x8xf32>
    %77 = arith.mulf %75, %76 : vector<4x8x8xf32>
    %78 = vector.broadcast %25 : vector<4x1x8xf32> to vector<4x8x8xf32>
    %79 = arith.addf %77, %78 : vector<4x8x8xf32>
    %cst_42 = arith.constant dense<0xFF800000> : vector<4x8xf32>
    %80 = vector.multi_reduction <maximumf>, %79, %cst_42 [2] : vector<4x8x8xf32> to vector<4x8xf32>
    %81 = vector.shape_cast %80 : vector<4x8xf32> to vector<4x8x1xf32>
    %82 = vector.broadcast %81 : vector<4x8x1xf32> to vector<4x8x8xf32>
    %83 = arith.subf %79, %82 : vector<4x8x8xf32>
    %84 = math.exp %83 : vector<4x8x8xf32>
    %cst_43 = arith.constant dense<0.000000e+00> : vector<4x8xf32>
    %85 = vector.multi_reduction <add>, %84, %cst_43 [2] : vector<4x8x8xf32> to vector<4x8xf32>
    %86 = vector.shape_cast %85 : vector<4x8xf32> to vector<4x8x1xf32>
    %87 = tpu.reciprocal %86 {approx = true} : vector<4x8x1xf32> -> vector<4x8x1xf32>
    %88 = vector.broadcast %87 : vector<4x8x1xf32> to vector<4x8x8xf32>
    %89 = arith.mulf %84, %88 : vector<4x8x8xf32>
    "tpu.trace_start"() <{level = 10 : i32, message = "bqk,bkd->bqd"}> : () -> ()
    %cst_44 = arith.constant dense<0.000000e+00> : vector<4x8x16xf32>
    %90 = tpu.matmul %89, %74, %cst_44 {dimension_numbers = #tpu.dot_dimension_numbers<[2], [1], [1], [2], [0, 0, 0, 1, 1, 2], [0], [0]>} : vector<4x8x8xf32>, vector<4x8x16xf32>, vector<4x8x16xf32> -> vector<4x8x16xf32>
    "tpu.trace_stop"() : () -> ()
    %c0_45 = arith.constant 0 : index
    %c0_46 = arith.constant 0 : index
    %c0_47 = arith.constant 0 : index
    %c0_48 = arith.constant 0 : index
    %91 = vector.load %arg10[%c0_45, %c0_46, %c0_47, %c0_48] : memref<2x2x16x32xf32, #tpu.memory_space<vmem>>, vector<1x2x16x32xf32>
    %92 = vector.shape_cast %91 : vector<1x2x16x32xf32> to vector<2x16x32xf32>
    %93 = vector.shape_cast %92 : vector<2x16x32xf32> to vector<1x2x16x32xf32>
    %94 = vector.shape_cast %93 : vector<1x2x16x32xf32> to vector<1x2x16x32xf32>
    %95 = vector.broadcast %94 : vector<1x2x16x32xf32> to vector<2x2x16x32xf32>
    %96 = vector.shape_cast %95 : vector<2x2x16x32xf32> to vector<4x16x32xf32>
    "tpu.trace_start"() <{level = 10 : i32, message = "bsd,bdh->bsh"}> : () -> ()
    %cst_49 = arith.constant dense<0.000000e+00> : vector<4x8x32xf32>
    %97 = tpu.matmul %90, %96, %cst_49 {dimension_numbers = #tpu.dot_dimension_numbers<[2], [1], [1], [2], [0, 0, 0, 1, 1, 2], [0], [0]>} : vector<4x8x16xf32>, vector<4x16x32xf32>, vector<4x8x32xf32> -> vector<4x8x32xf32>
    "tpu.trace_stop"() : () -> ()
    %98 = vector.shape_cast %97 : vector<4x8x32xf32> to vector<2x2x8x32xf32>
    %cst_50 = arith.constant dense<0.000000e+00> : vector<2x8x32xf32>
    %99 = vector.multi_reduction <add>, %98, %cst_50 [1] : vector<2x2x8x32xf32> to vector<2x8x32xf32>
    %c0_51 = arith.constant 0 : index
    %c0_52 = arith.constant 0 : index
    %c0_53 = arith.constant 0 : index
    %100 = vector.load %arg11[%c0_51, %c0_52, %c0_53] : memref<2x1x32xf32, #tpu.memory_space<vmem>>, vector<1x1x32xf32>
    %101 = vector.shape_cast %100 : vector<1x1x32xf32> to vector<1x32xf32>
    %102 = vector.shape_cast %101 : vector<1x32xf32> to vector<1x1x32xf32>
    %103 = vector.broadcast %102 : vector<1x1x32xf32> to vector<2x8x32xf32>
    %104 = arith.addf %99, %103 : vector<2x8x32xf32>
    %105 = arith.addf %24, %104 : vector<2x8x32xf32>
    %c0_54 = arith.constant 0 : index
    %c0_55 = arith.constant 0 : index
    %c0_56 = arith.constant 0 : index
    %106 = vector.load %arg12[%c0_54, %c0_55, %c0_56] : memref<2x1x32xf32, #tpu.memory_space<vmem>>, vector<1x1x32xf32>
    %107 = vector.shape_cast %106 : vector<1x1x32xf32> to vector<1x32xf32>
    %c0_57 = arith.constant 0 : index
    %c0_58 = arith.constant 0 : index
    %c0_59 = arith.constant 0 : index
    %108 = vector.load %arg13[%c0_57, %c0_58, %c0_59] : memref<2x1x32xf32, #tpu.memory_space<vmem>>, vector<1x1x32xf32>
    %109 = vector.shape_cast %108 : vector<1x1x32xf32> to vector<1x32xf32>
    %cst_60 = arith.constant dense<0.000000e+00> : vector<2x8xf32>
    %110 = vector.multi_reduction <add>, %105, %cst_60 [2] : vector<2x8x32xf32> to vector<2x8xf32>
    %111 = vector.shape_cast %110 : vector<2x8xf32> to vector<2x8x1xf32>
    %cst_61 = arith.constant 3.200000e+01 : f32
    %112 = vector.broadcast %cst_61 : f32 to vector<2x8x1xf32>
    %113 = arith.divf %111, %112 : vector<2x8x1xf32>
    %114 = vector.broadcast %113 : vector<2x8x1xf32> to vector<2x8x32xf32>
    %115 = arith.subf %105, %114 : vector<2x8x32xf32>
    %116 = arith.mulf %115, %115 : vector<2x8x32xf32>
    %cst_62 = arith.constant dense<0.000000e+00> : vector<2x8xf32>
    %117 = vector.multi_reduction <add>, %116, %cst_62 [2] : vector<2x8x32xf32> to vector<2x8xf32>
    %118 = vector.shape_cast %117 : vector<2x8xf32> to vector<2x8x1xf32>
    %cst_63 = arith.constant 3.200000e+01 : f32
    %119 = vector.broadcast %cst_63 : f32 to vector<2x8x1xf32>
    %120 = arith.divf %118, %119 : vector<2x8x1xf32>
    %cst_64 = arith.constant 9.99999996E-13 : f32
    %121 = vector.broadcast %cst_64 : f32 to vector<2x8x1xf32>
    %122 = arith.addf %120, %121 : vector<2x8x1xf32>
    %123 = math.rsqrt %122 : vector<2x8x1xf32>
    %124 = vector.broadcast %123 : vector<2x8x1xf32> to vector<2x8x32xf32>
    %125 = arith.mulf %115, %124 : vector<2x8x32xf32>
    %126 = vector.shape_cast %107 : vector<1x32xf32> to vector<1x1x32xf32>
    %127 = vector.broadcast %126 : vector<1x1x32xf32> to vector<2x8x32xf32>
    %128 = arith.mulf %125, %127 : vector<2x8x32xf32>
    %129 = vector.shape_cast %109 : vector<1x32xf32> to vector<1x1x32xf32>
    %130 = vector.broadcast %129 : vector<1x1x32xf32> to vector<2x8x32xf32>
    %131 = arith.addf %128, %130 : vector<2x8x32xf32>
    %132 = vector.shape_cast %131 : vector<2x8x32xf32> to vector<16x32xf32>
    %c0_65 = arith.constant 0 : index
    %c0_66 = arith.constant 0 : index
    %c0_67 = arith.constant 0 : index
    %133 = vector.load %arg14[%c0_65, %c0_66, %c0_67] : memref<2x32x64xf32, #tpu.memory_space<vmem>>, vector<1x32x64xf32>
    %134 = vector.shape_cast %133 : vector<1x32x64xf32> to vector<32x64xf32>
    %cst_68 = arith.constant dense<0.000000e+00> : vector<16x64xf32>
    %135 = tpu.matmul %132, %134, %cst_68 {dimension_numbers = #tpu.dot_dimension_numbers<[1], [0], [0], [1], [0, 0, 1, 1], [], []>} : vector<16x32xf32>, vector<32x64xf32>, vector<16x64xf32> -> vector<16x64xf32>
    %c0_69 = arith.constant 0 : index
    %c0_70 = arith.constant 0 : index
    %c0_71 = arith.constant 0 : index
    %136 = vector.load %arg15[%c0_69, %c0_70, %c0_71] : memref<2x1x64xf32, #tpu.memory_space<vmem>>, vector<1x1x64xf32>
    %137 = vector.shape_cast %136 : vector<1x1x64xf32> to vector<1x64xf32>
    %138 = vector.broadcast %137 : vector<1x64xf32> to vector<16x64xf32>
    %139 = arith.addf %135, %138 : vector<16x64xf32>
    %cst_72 = arith.constant 5.000000e-01 : f32
    %140 = vector.broadcast %cst_72 : f32 to vector<16x64xf32>
    %141 = arith.mulf %140, %139 : vector<16x64xf32>
    %cst_73 = arith.constant 4.471500e-02 : f32
    %142 = vector.broadcast %cst_73 : f32 to vector<16x64xf32>
    %143 = arith.mulf %142, %139 : vector<16x64xf32>
    %144 = arith.mulf %143, %139 : vector<16x64xf32>
    %145 = arith.mulf %144, %139 : vector<16x64xf32>
    %146 = arith.addf %139, %145 : vector<16x64xf32>
    %cst_74 = arith.constant 0.797884583 : f32
    %147 = vector.broadcast %cst_74 : f32 to vector<16x64xf32>
    %148 = arith.mulf %147, %146 : vector<16x64xf32>
    %149 = math.tanh %148 : vector<16x64xf32>
    %cst_75 = arith.constant 1.000000e+00 : f32
    %150 = vector.broadcast %cst_75 : f32 to vector<16x64xf32>
    %151 = arith.addf %150, %149 : vector<16x64xf32>
    %152 = arith.mulf %141, %151 : vector<16x64xf32>
    %c0_76 = arith.constant 0 : index
    %c0_77 = arith.constant 0 : index
    %c0_78 = arith.constant 0 : index
    %153 = vector.load %arg16[%c0_76, %c0_77, %c0_78] : memref<2x64x32xf32, #tpu.memory_space<vmem>>, vector<1x64x32xf32>
    %154 = vector.shape_cast %153 : vector<1x64x32xf32> to vector<64x32xf32>
    %cst_79 = arith.constant dense<0.000000e+00> : vector<16x32xf32>
    %155 = tpu.matmul %152, %154, %cst_79 {dimension_numbers = #tpu.dot_dimension_numbers<[1], [0], [0], [1], [0, 0, 1, 1], [], []>} : vector<16x64xf32>, vector<64x32xf32>, vector<16x32xf32> -> vector<16x32xf32>
    %c0_80 = arith.constant 0 : index
    %c0_81 = arith.constant 0 : index
    %c0_82 = arith.constant 0 : index
    %156 = vector.load %arg17[%c0_80, %c0_81, %c0_82] : memref<2x1x32xf32, #tpu.memory_space<vmem>>, vector<1x1x32xf32>
    %157 = vector.shape_cast %156 : vector<1x1x32xf32> to vector<1x32xf32>
    %158 = vector.broadcast %157 : vector<1x32xf32> to vector<16x32xf32>
    %159 = arith.addf %155, %158 : vector<16x32xf32>
    %160 = vector.shape_cast %159 : vector<16x32xf32> to vector<2x8x32xf32>
    %161 = arith.addf %131, %160 : vector<2x8x32xf32>
    %c0_83 = arith.constant 0 : index
    %c0_84 = arith.constant 0 : index
    %c0_85 = arith.constant 0 : index
    %162 = vector.load %arg18[%c0_83, %c0_84, %c0_85] : memref<2x1x32xf32, #tpu.memory_space<vmem>>, vector<1x1x32xf32>
    %163 = vector.shape_cast %162 : vector<1x1x32xf32> to vector<1x32xf32>
    %c0_86 = arith.constant 0 : index
    %c0_87 = arith.constant 0 : index
    %c0_88 = arith.constant 0 : index
    %164 = vector.load %arg19[%c0_86, %c0_87, %c0_88] : memref<2x1x32xf32, #tpu.memory_space<vmem>>, vector<1x1x32xf32>
    %165 = vector.shape_cast %164 : vector<1x1x32xf32> to vector<1x32xf32>
    %cst_89 = arith.constant dense<0.000000e+00> : vector<2x8xf32>
    %166 = vector.multi_reduction <add>, %161, %cst_89 [2] : vector<2x8x32xf32> to vector<2x8xf32>
    %167 = vector.shape_cast %166 : vector<2x8xf32> to vector<2x8x1xf32>
    %cst_90 = arith.constant 3.200000e+01 : f32
    %168 = vector.broadcast %cst_90 : f32 to vector<2x8x1xf32>
    %169 = arith.divf %167, %168 : vector<2x8x1xf32>
    %170 = vector.broadcast %169 : vector<2x8x1xf32> to vector<2x8x32xf32>
    %171 = arith.subf %161, %170 : vector<2x8x32xf32>
    %172 = arith.mulf %171, %171 : vector<2x8x32xf32>
    %cst_91 = arith.constant dense<0.000000e+00> : vector<2x8xf32>
    %173 = vector.multi_reduction <add>, %172, %cst_91 [2] : vector<2x8x32xf32> to vector<2x8xf32>
    %174 = vector.shape_cast %173 : vector<2x8xf32> to vector<2x8x1xf32>
    %cst_92 = arith.constant 3.200000e+01 : f32
    %175 = vector.broadcast %cst_92 : f32 to vector<2x8x1xf32>
    %176 = arith.divf %174, %175 : vector<2x8x1xf32>
    %cst_93 = arith.constant 9.99999996E-13 : f32
    %177 = vector.broadcast %cst_93 : f32 to vector<2x8x1xf32>
    %178 = arith.addf %176, %177 : vector<2x8x1xf32>
    %179 = math.rsqrt %178 : vector<2x8x1xf32>
    %180 = vector.broadcast %179 : vector<2x8x1xf32> to vector<2x8x32xf32>
    %181 = arith.mulf %171, %180 : vector<2x8x32xf32>
    %182 = vector.shape_cast %163 : vector<1x32xf32> to vector<1x1x32xf32>
    %183 = vector.broadcast %182 : vector<1x1x32xf32> to vector<2x8x32xf32>
    %184 = arith.mulf %181, %183 : vector<2x8x32xf32>
    %185 = vector.shape_cast %165 : vector<1x32xf32> to vector<1x1x32xf32>
    %186 = vector.broadcast %185 : vector<1x1x32xf32> to vector<2x8x32xf32>
    %187 = arith.addf %184, %186 : vector<2x8x32xf32>
    %188 = vector.shape_cast %187 : vector<2x8x32xf32> to vector<2x1x8x32xf32>
    %189 = vector.shape_cast %188 : vector<2x1x8x32xf32> to vector<2x1x8x32xf32>
    %190 = vector.broadcast %189 : vector<2x1x8x32xf32> to vector<2x2x8x32xf32>
    %191 = vector.shape_cast %190 : vector<2x2x8x32xf32> to vector<4x8x32xf32>
    %c1 = arith.constant 1 : index
    %c0_94 = arith.constant 0 : index
    %c0_95 = arith.constant 0 : index
    %c0_96 = arith.constant 0 : index
    %192 = vector.load %arg4[%c1, %c0_94, %c0_95, %c0_96] : memref<2x2x32x16xf32, #tpu.memory_space<vmem>>, vector<1x2x32x16xf32>
    %193 = vector.shape_cast %192 : vector<1x2x32x16xf32> to vector<2x32x16xf32>
    %194 = vector.shape_cast %193 : vector<2x32x16xf32> to vector<1x2x32x16xf32>
    %195 = vector.shape_cast %194 : vector<1x2x32x16xf32> to vector<1x2x32x16xf32>
    %196 = vector.broadcast %195 : vector<1x2x32x16xf32> to vector<2x2x32x16xf32>
    %197 = vector.shape_cast %196 : vector<2x2x32x16xf32> to vector<4x32x16xf32>
    "tpu.trace_start"() <{level = 10 : i32, message = "bsh,bhd->bsd"}> : () -> ()
    %cst_97 = arith.constant dense<0.000000e+00> : vector<4x8x16xf32>
    %198 = tpu.matmul %191, %197, %cst_97 {dimension_numbers = #tpu.dot_dimension_numbers<[2], [1], [1], [2], [0, 0, 0, 1, 1, 2], [0], [0]>} : vector<4x8x32xf32>, vector<4x32x16xf32>, vector<4x8x16xf32> -> vector<4x8x16xf32>
    "tpu.trace_stop"() : () -> ()
    %c1_98 = arith.constant 1 : index
    %c0_99 = arith.constant 0 : index
    %c0_100 = arith.constant 0 : index
    %c0_101 = arith.constant 0 : index
    %199 = vector.load %arg7[%c1_98, %c0_99, %c0_100, %c0_101] : memref<2x2x1x16xf32, #tpu.memory_space<vmem>>, vector<1x2x1x16xf32>
    %200 = vector.shape_cast %199 : vector<1x2x1x16xf32> to vector<2x1x16xf32>
    %201 = vector.shape_cast %200 : vector<2x1x16xf32> to vector<1x2x1x16xf32>
    %202 = vector.shape_cast %201 : vector<1x2x1x16xf32> to vector<1x2x1x16xf32>
    %203 = vector.broadcast %202 : vector<1x2x1x16xf32> to vector<2x2x1x16xf32>
    %204 = vector.shape_cast %203 : vector<2x2x1x16xf32> to vector<4x1x16xf32>
    %205 = vector.broadcast %204 : vector<4x1x16xf32> to vector<4x8x16xf32>
    %206 = arith.addf %198, %205 : vector<4x8x16xf32>
    %c1_102 = arith.constant 1 : index
    %c0_103 = arith.constant 0 : index
    %c0_104 = arith.constant 0 : index
    %c0_105 = arith.constant 0 : index
    %207 = vector.load %arg5[%c1_102, %c0_103, %c0_104, %c0_105] : memref<2x2x32x16xf32, #tpu.memory_space<vmem>>, vector<1x2x32x16xf32>
    %208 = vector.shape_cast %207 : vector<1x2x32x16xf32> to vector<2x32x16xf32>
    %209 = vector.shape_cast %208 : vector<2x32x16xf32> to vector<1x2x32x16xf32>
    %210 = vector.shape_cast %209 : vector<1x2x32x16xf32> to vector<1x2x32x16xf32>
    %211 = vector.broadcast %210 : vector<1x2x32x16xf32> to vector<2x2x32x16xf32>
    %212 = vector.shape_cast %211 : vector<2x2x32x16xf32> to vector<4x32x16xf32>
    "tpu.trace_start"() <{level = 10 : i32, message = "bsh,bhd->bsd"}> : () -> ()
    %cst_106 = arith.constant dense<0.000000e+00> : vector<4x8x16xf32>
    %213 = tpu.matmul %191, %212, %cst_106 {dimension_numbers = #tpu.dot_dimension_numbers<[2], [1], [1], [2], [0, 0, 0, 1, 1, 2], [0], [0]>} : vector<4x8x32xf32>, vector<4x32x16xf32>, vector<4x8x16xf32> -> vector<4x8x16xf32>
    "tpu.trace_stop"() : () -> ()
    %c1_107 = arith.constant 1 : index
    %c0_108 = arith.constant 0 : index
    %c0_109 = arith.constant 0 : index
    %c0_110 = arith.constant 0 : index
    %214 = vector.load %arg8[%c1_107, %c0_108, %c0_109, %c0_110] : memref<2x2x1x16xf32, #tpu.memory_space<vmem>>, vector<1x2x1x16xf32>
    %215 = vector.shape_cast %214 : vector<1x2x1x16xf32> to vector<2x1x16xf32>
    %216 = vector.shape_cast %215 : vector<2x1x16xf32> to vector<1x2x1x16xf32>
    %217 = vector.shape_cast %216 : vector<1x2x1x16xf32> to vector<1x2x1x16xf32>
    %218 = vector.broadcast %217 : vector<1x2x1x16xf32> to vector<2x2x1x16xf32>
    %219 = vector.shape_cast %218 : vector<2x2x1x16xf32> to vector<4x1x16xf32>
    %220 = vector.broadcast %219 : vector<4x1x16xf32> to vector<4x8x16xf32>
    %221 = arith.addf %213, %220 : vector<4x8x16xf32>
    %c1_111 = arith.constant 1 : index
    %c0_112 = arith.constant 0 : index
    %c0_113 = arith.constant 0 : index
    %c0_114 = arith.constant 0 : index
    %222 = vector.load %arg6[%c1_111, %c0_112, %c0_113, %c0_114] : memref<2x2x32x16xf32, #tpu.memory_space<vmem>>, vector<1x2x32x16xf32>
    %223 = vector.shape_cast %222 : vector<1x2x32x16xf32> to vector<2x32x16xf32>
    %224 = vector.shape_cast %223 : vector<2x32x16xf32> to vector<1x2x32x16xf32>
    %225 = vector.shape_cast %224 : vector<1x2x32x16xf32> to vector<1x2x32x16xf32>
    %226 = vector.broadcast %225 : vector<1x2x32x16xf32> to vector<2x2x32x16xf32>
    %227 = vector.shape_cast %226 : vector<2x2x32x16xf32> to vector<4x32x16xf32>
    "tpu.trace_start"() <{level = 10 : i32, message = "bsh,bhd->bsd"}> : () -> ()
    %cst_115 = arith.constant dense<0.000000e+00> : vector<4x8x16xf32>
    %228 = tpu.matmul %191, %227, %cst_115 {dimension_numbers = #tpu.dot_dimension_numbers<[2], [1], [1], [2], [0, 0, 0, 1, 1, 2], [0], [0]>} : vector<4x8x32xf32>, vector<4x32x16xf32>, vector<4x8x16xf32> -> vector<4x8x16xf32>
    "tpu.trace_stop"() : () -> ()
    %c1_116 = arith.constant 1 : index
    %c0_117 = arith.constant 0 : index
    %c0_118 = arith.constant 0 : index
    %c0_119 = arith.constant 0 : index
    %229 = vector.load %arg9[%c1_116, %c0_117, %c0_118, %c0_119] : memref<2x2x1x16xf32, #tpu.memory_space<vmem>>, vector<1x2x1x16xf32>
    %230 = vector.shape_cast %229 : vector<1x2x1x16xf32> to vector<2x1x16xf32>
    %231 = vector.shape_cast %230 : vector<2x1x16xf32> to vector<1x2x1x16xf32>
    %232 = vector.shape_cast %231 : vector<1x2x1x16xf32> to vector<1x2x1x16xf32>
    %233 = vector.broadcast %232 : vector<1x2x1x16xf32> to vector<2x2x1x16xf32>
    %234 = vector.shape_cast %233 : vector<2x2x1x16xf32> to vector<4x1x16xf32>
    %235 = vector.broadcast %234 : vector<4x1x16xf32> to vector<4x8x16xf32>
    %236 = arith.addf %228, %235 : vector<4x8x16xf32>
    "tpu.trace_start"() <{level = 10 : i32, message = "bqd,bkd->bqk"}> : () -> ()
    %cst_120 = arith.constant dense<0.000000e+00> : vector<4x8x8xf32>
    %237 = tpu.matmul %206, %221, %cst_120 {dimension_numbers = #tpu.dot_dimension_numbers<[2], [2], [1], [1], [0, 0, 0, 1, 1, 1], [0], [0]>} : vector<4x8x16xf32>, vector<4x8x16xf32>, vector<4x8x8xf32> -> vector<4x8x8xf32>
    "tpu.trace_stop"() : () -> ()
    %cst_121 = arith.constant 2.500000e-01 : f32
    %238 = vector.broadcast %cst_121 : f32 to vector<4x8x8xf32>
    %239 = arith.mulf %237, %238 : vector<4x8x8xf32>
    %240 = vector.broadcast %25 : vector<4x1x8xf32> to vector<4x8x8xf32>
    %241 = arith.addf %239, %240 : vector<4x8x8xf32>
    %cst_122 = arith.constant dense<0xFF800000> : vector<4x8xf32>
    %242 = vector.multi_reduction <maximumf>, %241, %cst_122 [2] : vector<4x8x8xf32> to vector<4x8xf32>
    %243 = vector.shape_cast %242 : vector<4x8xf32> to vector<4x8x1xf32>
    %244 = vector.broadcast %243 : vector<4x8x1xf32> to vector<4x8x8xf32>
    %245 = arith.subf %241, %244 : vector<4x8x8xf32>
    %246 = math.exp %245 : vector<4x8x8xf32>
    %cst_123 = arith.constant dense<0.000000e+00> : vector<4x8xf32>
    %247 = vector.multi_reduction <add>, %246, %cst_123 [2] : vector<4x8x8xf32> to vector<4x8xf32>
    %248 = vector.shape_cast %247 : vector<4x8xf32> to vector<4x8x1xf32>
    %249 = tpu.reciprocal %248 {approx = true} : vector<4x8x1xf32> -> vector<4x8x1xf32>
    %250 = vector.broadcast %249 : vector<4x8x1xf32> to vector<4x8x8xf32>
    %251 = arith.mulf %246, %250 : vector<4x8x8xf32>
    "tpu.trace_start"() <{level = 10 : i32, message = "bqk,bkd->bqd"}> : () -> ()
    %cst_124 = arith.constant dense<0.000000e+00> : vector<4x8x16xf32>
    %252 = tpu.matmul %251, %236, %cst_124 {dimension_numbers = #tpu.dot_dimension_numbers<[2], [1], [1], [2], [0, 0, 0, 1, 1, 2], [0], [0]>} : vector<4x8x8xf32>, vector<4x8x16xf32>, vector<4x8x16xf32> -> vector<4x8x16xf32>
    "tpu.trace_stop"() : () -> ()
    %c1_125 = arith.constant 1 : index
    %c0_126 = arith.constant 0 : index
    %c0_127 = arith.constant 0 : index
    %c0_128 = arith.constant 0 : index
    %253 = vector.load %arg10[%c1_125, %c0_126, %c0_127, %c0_128] : memref<2x2x16x32xf32, #tpu.memory_space<vmem>>, vector<1x2x16x32xf32>
    %254 = vector.shape_cast %253 : vector<1x2x16x32xf32> to vector<2x16x32xf32>
    %255 = vector.shape_cast %254 : vector<2x16x32xf32> to vector<1x2x16x32xf32>
    %256 = vector.shape_cast %255 : vector<1x2x16x32xf32> to vector<1x2x16x32xf32>
    %257 = vector.broadcast %256 : vector<1x2x16x32xf32> to vector<2x2x16x32xf32>
    %258 = vector.shape_cast %257 : vector<2x2x16x32xf32> to vector<4x16x32xf32>
    "tpu.trace_start"() <{level = 10 : i32, message = "bsd,bdh->bsh"}> : () -> ()
    %cst_129 = arith.constant dense<0.000000e+00> : vector<4x8x32xf32>
    %259 = tpu.matmul %252, %258, %cst_129 {dimension_numbers = #tpu.dot_dimension_numbers<[2], [1], [1], [2], [0, 0, 0, 1, 1, 2], [0], [0]>} : vector<4x8x16xf32>, vector<4x16x32xf32>, vector<4x8x32xf32> -> vector<4x8x32xf32>
    "tpu.trace_stop"() : () -> ()
    %260 = vector.shape_cast %259 : vector<4x8x32xf32> to vector<2x2x8x32xf32>
    %cst_130 = arith.constant dense<0.000000e+00> : vector<2x8x32xf32>
    %261 = vector.multi_reduction <add>, %260, %cst_130 [1] : vector<2x2x8x32xf32> to vector<2x8x32xf32>
    %c1_131 = arith.constant 1 : index
    %c0_132 = arith.constant 0 : index
    %c0_133 = arith.constant 0 : index
    %262 = vector.load %arg11[%c1_131, %c0_132, %c0_133] : memref<2x1x32xf32, #tpu.memory_space<vmem>>, vector<1x1x32xf32>
    %263 = vector.shape_cast %262 : vector<1x1x32xf32> to vector<1x32xf32>
    %264 = vector.shape_cast %263 : vector<1x32xf32> to vector<1x1x32xf32>
    %265 = vector.broadcast %264 : vector<1x1x32xf32> to vector<2x8x32xf32>
    %266 = arith.addf %261, %265 : vector<2x8x32xf32>
    %267 = arith.addf %187, %266 : vector<2x8x32xf32>
    %c1_134 = arith.constant 1 : index
    %c0_135 = arith.constant 0 : index
    %c0_136 = arith.constant 0 : index
    %268 = vector.load %arg12[%c1_134, %c0_135, %c0_136] : memref<2x1x32xf32, #tpu.memory_space<vmem>>, vector<1x1x32xf32>
    %269 = vector.shape_cast %268 : vector<1x1x32xf32> to vector<1x32xf32>
    %c1_137 = arith.constant 1 : index
    %c0_138 = arith.constant 0 : index
    %c0_139 = arith.constant 0 : index
    %270 = vector.load %arg13[%c1_137, %c0_138, %c0_139] : memref<2x1x32xf32, #tpu.memory_space<vmem>>, vector<1x1x32xf32>
    %271 = vector.shape_cast %270 : vector<1x1x32xf32> to vector<1x32xf32>
    %cst_140 = arith.constant dense<0.000000e+00> : vector<2x8xf32>
    %272 = vector.multi_reduction <add>, %267, %cst_140 [2] : vector<2x8x32xf32> to vector<2x8xf32>
    %273 = vector.shape_cast %272 : vector<2x8xf32> to vector<2x8x1xf32>
    %cst_141 = arith.constant 3.200000e+01 : f32
    %274 = vector.broadcast %cst_141 : f32 to vector<2x8x1xf32>
    %275 = arith.divf %273, %274 : vector<2x8x1xf32>
    %276 = vector.broadcast %275 : vector<2x8x1xf32> to vector<2x8x32xf32>
    %277 = arith.subf %267, %276 : vector<2x8x32xf32>
    %278 = arith.mulf %277, %277 : vector<2x8x32xf32>
    %cst_142 = arith.constant dense<0.000000e+00> : vector<2x8xf32>
    %279 = vector.multi_reduction <add>, %278, %cst_142 [2] : vector<2x8x32xf32> to vector<2x8xf32>
    %280 = vector.shape_cast %279 : vector<2x8xf32> to vector<2x8x1xf32>
    %cst_143 = arith.constant 3.200000e+01 : f32
    %281 = vector.broadcast %cst_143 : f32 to vector<2x8x1xf32>
    %282 = arith.divf %280, %281 : vector<2x8x1xf32>
    %cst_144 = arith.constant 9.99999996E-13 : f32
    %283 = vector.broadcast %cst_144 : f32 to vector<2x8x1xf32>
    %284 = arith.addf %282, %283 : vector<2x8x1xf32>
    %285 = math.rsqrt %284 : vector<2x8x1xf32>
    %286 = vector.broadcast %285 : vector<2x8x1xf32> to vector<2x8x32xf32>
    %287 = arith.mulf %277, %286 : vector<2x8x32xf32>
    %288 = vector.shape_cast %269 : vector<1x32xf32> to vector<1x1x32xf32>
    %289 = vector.broadcast %288 : vector<1x1x32xf32> to vector<2x8x32xf32>
    %290 = arith.mulf %287, %289 : vector<2x8x32xf32>
    %291 = vector.shape_cast %271 : vector<1x32xf32> to vector<1x1x32xf32>
    %292 = vector.broadcast %291 : vector<1x1x32xf32> to vector<2x8x32xf32>
    %293 = arith.addf %290, %292 : vector<2x8x32xf32>
    %294 = vector.shape_cast %293 : vector<2x8x32xf32> to vector<16x32xf32>
    %c1_145 = arith.constant 1 : index
    %c0_146 = arith.constant 0 : index
    %c0_147 = arith.constant 0 : index
    %295 = vector.load %arg14[%c1_145, %c0_146, %c0_147] : memref<2x32x64xf32, #tpu.memory_space<vmem>>, vector<1x32x64xf32>
    %296 = vector.shape_cast %295 : vector<1x32x64xf32> to vector<32x64xf32>
    %cst_148 = arith.constant dense<0.000000e+00> : vector<16x64xf32>
    %297 = tpu.matmul %294, %296, %cst_148 {dimension_numbers = #tpu.dot_dimension_numbers<[1], [0], [0], [1], [0, 0, 1, 1], [], []>} : vector<16x32xf32>, vector<32x64xf32>, vector<16x64xf32> -> vector<16x64xf32>
    %c1_149 = arith.constant 1 : index
    %c0_150 = arith.constant 0 : index
    %c0_151 = arith.constant 0 : index
    %298 = vector.load %arg15[%c1_149, %c0_150, %c0_151] : memref<2x1x64xf32, #tpu.memory_space<vmem>>, vector<1x1x64xf32>
    %299 = vector.shape_cast %298 : vector<1x1x64xf32> to vector<1x64xf32>
    %300 = vector.broadcast %299 : vector<1x64xf32> to vector<16x64xf32>
    %301 = arith.addf %297, %300 : vector<16x64xf32>
    %cst_152 = arith.constant 5.000000e-01 : f32
    %302 = vector.broadcast %cst_152 : f32 to vector<16x64xf32>
    %303 = arith.mulf %302, %301 : vector<16x64xf32>
    %cst_153 = arith.constant 4.471500e-02 : f32
    %304 = vector.broadcast %cst_153 : f32 to vector<16x64xf32>
    %305 = arith.mulf %304, %301 : vector<16x64xf32>
    %306 = arith.mulf %305, %301 : vector<16x64xf32>
    %307 = arith.mulf %306, %301 : vector<16x64xf32>
    %308 = arith.addf %301, %307 : vector<16x64xf32>
    %cst_154 = arith.constant 0.797884583 : f32
    %309 = vector.broadcast %cst_154 : f32 to vector<16x64xf32>
    %310 = arith.mulf %309, %308 : vector<16x64xf32>
    %311 = math.tanh %310 : vector<16x64xf32>
    %cst_155 = arith.constant 1.000000e+00 : f32
    %312 = vector.broadcast %cst_155 : f32 to vector<16x64xf32>
    %313 = arith.addf %312, %311 : vector<16x64xf32>
    %314 = arith.mulf %303, %313 : vector<16x64xf32>
    %c1_156 = arith.constant 1 : index
    %c0_157 = arith.constant 0 : index
    %c0_158 = arith.constant 0 : index
    %315 = vector.load %arg16[%c1_156, %c0_157, %c0_158] : memref<2x64x32xf32, #tpu.memory_space<vmem>>, vector<1x64x32xf32>
    %316 = vector.shape_cast %315 : vector<1x64x32xf32> to vector<64x32xf32>
    %cst_159 = arith.constant dense<0.000000e+00> : vector<16x32xf32>
    %317 = tpu.matmul %314, %316, %cst_159 {dimension_numbers = #tpu.dot_dimension_numbers<[1], [0], [0], [1], [0, 0, 1, 1], [], []>} : vector<16x64xf32>, vector<64x32xf32>, vector<16x32xf32> -> vector<16x32xf32>
    %c1_160 = arith.constant 1 : index
    %c0_161 = arith.constant 0 : index
    %c0_162 = arith.constant 0 : index
    %318 = vector.load %arg17[%c1_160, %c0_161, %c0_162] : memref<2x1x32xf32, #tpu.memory_space<vmem>>, vector<1x1x32xf32>
    %319 = vector.shape_cast %318 : vector<1x1x32xf32> to vector<1x32xf32>
    %320 = vector.broadcast %319 : vector<1x32xf32> to vector<16x32xf32>
    %321 = arith.addf %317, %320 : vector<16x32xf32>
    %322 = vector.shape_cast %321 : vector<16x32xf32> to vector<2x8x32xf32>
    %323 = arith.addf %293, %322 : vector<2x8x32xf32>
    %c1_163 = arith.constant 1 : index
    %c0_164 = arith.constant 0 : index
    %c0_165 = arith.constant 0 : index
    %324 = vector.load %arg18[%c1_163, %c0_164, %c0_165] : memref<2x1x32xf32, #tpu.memory_space<vmem>>, vector<1x1x32xf32>
    %325 = vector.shape_cast %324 : vector<1x1x32xf32> to vector<1x32xf32>
    %c1_166 = arith.constant 1 : index
    %c0_167 = arith.constant 0 : index
    %c0_168 = arith.constant 0 : index
    %326 = vector.load %arg19[%c1_166, %c0_167, %c0_168] : memref<2x1x32xf32, #tpu.memory_space<vmem>>, vector<1x1x32xf32>
    %327 = vector.shape_cast %326 : vector<1x1x32xf32> to vector<1x32xf32>
    %cst_169 = arith.constant dense<0.000000e+00> : vector<2x8xf32>
    %328 = vector.multi_reduction <add>, %323, %cst_169 [2] : vector<2x8x32xf32> to vector<2x8xf32>
    %329 = vector.shape_cast %328 : vector<2x8xf32> to vector<2x8x1xf32>
    %cst_170 = arith.constant 3.200000e+01 : f32
    %330 = vector.broadcast %cst_170 : f32 to vector<2x8x1xf32>
    %331 = arith.divf %329, %330 : vector<2x8x1xf32>
    %332 = vector.broadcast %331 : vector<2x8x1xf32> to vector<2x8x32xf32>
    %333 = arith.subf %323, %332 : vector<2x8x32xf32>
    %334 = arith.mulf %333, %333 : vector<2x8x32xf32>
    %cst_171 = arith.constant dense<0.000000e+00> : vector<2x8xf32>
    %335 = vector.multi_reduction <add>, %334, %cst_171 [2] : vector<2x8x32xf32> to vector<2x8xf32>
    %336 = vector.shape_cast %335 : vector<2x8xf32> to vector<2x8x1xf32>
    %cst_172 = arith.constant 3.200000e+01 : f32
    %337 = vector.broadcast %cst_172 : f32 to vector<2x8x1xf32>
    %338 = arith.divf %336, %337 : vector<2x8x1xf32>
    %cst_173 = arith.constant 9.99999996E-13 : f32
    %339 = vector.broadcast %cst_173 : f32 to vector<2x8x1xf32>
    %340 = arith.addf %338, %339 : vector<2x8x1xf32>
    %341 = math.rsqrt %340 : vector<2x8x1xf32>
    %342 = vector.broadcast %341 : vector<2x8x1xf32> to vector<2x8x32xf32>
    %343 = arith.mulf %333, %342 : vector<2x8x32xf32>
    %344 = vector.shape_cast %325 : vector<1x32xf32> to vector<1x1x32xf32>
    %345 = vector.broadcast %344 : vector<1x1x32xf32> to vector<2x8x32xf32>
    %346 = arith.mulf %343, %345 : vector<2x8x32xf32>
    %347 = vector.shape_cast %327 : vector<1x32xf32> to vector<1x1x32xf32>
    %348 = vector.broadcast %347 : vector<1x1x32xf32> to vector<2x8x32xf32>
    %349 = arith.addf %346, %348 : vector<2x8x32xf32>
    %350 = vector.extract_strided_slice %349 {offsets = [0, 0, 0], sizes = [2, 1, 32], strides = [1, 1, 1]} : vector<2x8x32xf32> to vector<2x1x32xf32>
    %351 = vector.shape_cast %350 : vector<2x1x32xf32> to vector<2x32xf32>
    %c0_174 = arith.constant 0 : index
    %c0_175 = arith.constant 0 : index
    %352 = vector.load %arg20[%c0_174, %c0_175] : memref<32x32xf32, #tpu.memory_space<vmem>>, vector<32x32xf32>
    %cst_176 = arith.constant dense<0.000000e+00> : vector<2x32xf32>
    %353 = tpu.matmul %351, %352, %cst_176 {dimension_numbers = #tpu.dot_dimension_numbers<[1], [0], [0], [1], [0, 0, 1, 1], [], []>} : vector<2x32xf32>, vector<32x32xf32>, vector<2x32xf32> -> vector<2x32xf32>
    %c0_177 = arith.constant 0 : index
    %c0_178 = arith.constant 0 : index
    %354 = vector.load %arg21[%c0_177, %c0_178] : memref<1x32xf32, #tpu.memory_space<vmem>>, vector<1x32xf32>
    %355 = vector.broadcast %354 : vector<1x32xf32> to vector<2x32xf32>
    %356 = arith.addf %353, %355 : vector<2x32xf32>
    %357 = math.tanh %356 : vector<2x32xf32>
    %c0_179 = arith.constant 0 : index
    %c0_180 = arith.constant 0 : index
    %358 = vector.load %arg22[%c0_179, %c0_180] : memref<32x128xf32, #tpu.memory_space<vmem>>, vector<32x128xf32>
    %cst_181 = arith.constant dense<0.000000e+00> : vector<2x128xf32>
    %359 = tpu.matmul %357, %358, %cst_181 {dimension_numbers = #tpu.dot_dimension_numbers<[1], [0], [0], [1], [0, 0, 1, 1], [], []>} : vector<2x32xf32>, vector<32x128xf32>, vector<2x128xf32> -> vector<2x128xf32>
    %c0_182 = arith.constant 0 : index
    %c0_183 = arith.constant 0 : index
    %360 = vector.load %arg23[%c0_182, %c0_183] : memref<1x128xf32, #tpu.memory_space<vmem>>, vector<1x128xf32>
    %361 = vector.broadcast %360 : vector<1x128xf32> to vector<2x128xf32>
    %362 = arith.addf %359, %361 : vector<2x128xf32>
    %c0_184 = arith.constant 0 : index
    %c0_185 = arith.constant 0 : index
    %363 = vector.load %arg24[%c0_184, %c0_185] : memref<2x128xf32, #tpu.memory_space<vmem>>, vector<2x128xf32>
    tpu.vector_store %arg24[%c0_184, %c0_185], %362 {strides = array<i32>} : memref<2x128xf32, #tpu.memory_space<vmem>>, vector<2x128xf32>,
    return
  }
}

</mosaic_0001>

<bundles_post_ra>
// kernel: _lambda_.1
= control target key start
LH: loop header
LB: loop body
LE: loop exit
PB: predicated region body
PF: predicated region fallthrough
CT: control target
= control target key end

     0   :  { %s6737_s0 = inlined_call_operand.vmem [shape: f32[2,8,32], index: 0, kind: input, shape index: {}]   ;;  %s6738_s1 = inlined_call_operand.vmem [shape: f32[4,1,8], index: 1, kind: input, shape index: {}]   ;;  %s6739_s2 = inlined_call_operand.vmem [shape: f32[1,32], index: 2, kind: input, shape index: {}]   ;;  %s6740_s3 = inlined_call_operand.vmem [shape: f32[1,32], index: 3, kind: input, shape index: {}]   ;;  %s6741_s4 = inlined_call_operand.vmem [shape: f32[2,2,32,16], index: 4, kind: input, shape index: {}]   ;;  %s6742_s5 = inlined_call_operand.vmem [shape: f32[2,2,32,16], index: 5, kind: input, shape index: {}]   ;;  %s6743_s6 = inlined_call_operand.vmem [shape: f32[2,2,32,16], index: 6, kind: input, shape index: {}]   ;;  %s6744_s7 = inlined_call_operand.vmem [shape: f32[2,2,1,16], index: 7, kind: input, shape index: {}]   ;;  %s6745_s8 = inlined_call_operand.vmem [shape: f32[2,2,1,16], index: 8, kind: input, shape index: {}]   ;;  %s6746_s9 = inlined_call_operand.vmem [shape: f32[2,2,1,16], index: 9, kind: input, shape index: {}]   ;;  %s6747_s10 = inlined_call_operand.vmem [shape: f32[2,2,16,32], index: 10, kind: input, shape index: {}]   ;;  %s6748_s11 = inlined_call_operand.vmem [shape: f32[2,1,32], index: 11, kind: input, shape index: {}]   ;;  %s6749_s12 = inlined_call_operand.vmem [shape: f32[2,1,32], index: 12, kind: input, shape index: {}]   ;;  %s6750_s13 = inlined_call_operand.vmem [shape: f32[2,1,32], index: 13, kind: input, shape index: {}]   ;;  %s6751_s14 = inlined_call_operand.vmem [shape: f32[2,32,64], index: 14, kind: input, shape index: {}]   ;;  %s6752_s15 = inlined_call_operand.vmem [shape: f32[2,1,64], index: 15, kind: input, shape index: {}]   ;;  %s6753_s16 = inlined_call_operand.vmem [shape: f32[2,64,32], index: 16, kind: input, shape index: {}]   ;;  %s6754_s17 = inlined_call_operand.vmem [shape: f32[2,1,32], index: 17, kind: input, shape index: {}]   ;;  %s6755_s18 = inlined_call_operand.vmem [shape: f32[2,1,32], index: 18, kind: input, shape index: {}]   ;;  %s6756_s19 = inlined_call_operand.vmem [shape: f32[2,1,32], index: 19, kind: input, shape index: {}]   ;;  %s6757_s20 = inlined_call_operand.vmem [shape: f32[32,32], index: 20, kind: input, shape index: {}]   ;;  %s6758_s21 = inlined_call_operand.vmem [shape: f32[1,32], index: 21, kind: input, shape index: {}]   ;;  %s6759_s22 = inlined_call_operand.vmem [shape: f32[32,128], index: 22, kind: input, shape index: {}]   ;;  %s6760_s23 = inlined_call_operand.vmem [shape: f32[1,128], index: 23, kind: input, shape index: {}]   ;;  %s6761_s24 = inlined_call_operand.hbm [shape: f32[2,128], index: 24, kind: output, shape index: {}]  }
   0x1   :  { %6769 = sst [smem:[#allocation5_spill]] %s6737_s0 }
   0x2   :  { %6770 = sst [smem:[#allocation6_spill]] %s6738_s1 }
   0x3   :  { %6771 = sst [smem:[#allocation7_spill]] %s6739_s2 }
   0x4   :  { %6772 = sst [smem:[#allocation8_spill]] %s6740_s3 }
   0x5   :  { %6773 = sst [smem:[#allocation9_spill]] %s6741_s4 }
   0x6   :  { %6774 = sst [smem:[#allocation10_spill]] %s6742_s5 }
   0x7   :  { %6775 = sst [smem:[#allocation11_spill]] %s6743_s6 }
   0x8   :  { %6776 = sst [smem:[#allocation12_spill]] %s6744_s7 }
   0x9   :  { %6777 = sst [smem:[#allocation13_spill]] %s6745_s8 }
   0xa   :  { %s6778_s27 = sld [smem:[#allocation5_spill]]  ;;  %vm82_vm0 = vcmask 261120  }
  0x10   :  { %v78_v0 = vld [vmem:[%s6778_s27] sm:$0xff]  ;;  %v79_v1 = vld [vmem:[%s6778_s27 + $0x8] sm:$0xff] }
  0x11   :  { %29 = vsyncpa [#allocation3], 0  ;;  %v83_v2 = vsel %vm82_vm0, %v78_v0, 0.0  ;;  %v86_v3 = vsel %vm82_vm0, %v79_v1, 0.0  ;;  %s6779_s0 = sld [smem:[#allocation9_spill]]  ;;  %v5870_v19 = vmov 0.0|0.0  }
  0x12   :  { %84 = vadd.xlane.f32.xlu0 %v83_v2  ;;  %5552 = vmatprep.subr.bf16.mxu0 %v5870_v19  ;;  %vm5871_vm1 = vmmov 0   ;;  %v5872_v27 = vmov 0.0   ;;  %s6780_s3 = sld [smem:[#allocation7_spill]]  ;;  %s6781_s4 = sld [smem:[#allocation8_spill]]  ;;  %vm1042_vm2 = vcmask 130048   ;;  %vm1379_vm3 = vcmask 64512  }
  0x13   :  { %5558 = vmatprep.subr.bf16.mxu1 %v5870_v19  ;;  %5078 = vmatprep.mubr.msk.f32.mxu0 %vm5871_vm1, %v5872_v27  ;;  %s6782_s26 = sld [smem:[#allocation10_spill]]  ;;  %s6783_s2 = sld [smem:[#allocation11_spill]]  ;;  %vm2198_vm4 = vcmask 523264   ;;  %vm4525_vm5 = vcmask 1041409  }
  0x14   :  { %5089 = vmatprep.mubr.msk.f32.mxu1 %vm5871_vm1, %v5872_v27  ;;  %s6784_s25 = sld [smem:[#allocation13_spill]]  ;;  %s6785_s1 = sld [smem:[#allocation12_spill]] }
  0x15   :  { %s6786_s5 = sld [smem:[#allocation6_spill]] }
  0x16   :  { %87 = vadd.xlane.f32.xlu0 %v86_v3 }
  0x17   :  { %v130_v14 = vld [vmem:[%s6779_s0] sm:$0xff]  ;;  %v131_v15 = vld [vmem:[%s6779_s0 + $0x8] sm:$0xff]  ;;  %v132_v21 = vld [vmem:[%s6779_s0 + $0x10] sm:$0xff] }
  0x18   :  { %v134_v16 = vld [vmem:[%s6779_s0 + $0x20] sm:$0xff]  ;;  %v5553_v17 = vpack.c.bf16 %v131_v15, %v130_v14  ;;  %v135_v18 = vld [vmem:[%s6779_s0 + $0x28] sm:$0xff]  ;;  %v133_v22 = vld [vmem:[%s6779_s0 + $0x18] sm:$0xff] }
  0x19   :  { %v5559_v20 = vpack.c.bf16 %v135_v18, %v134_v16  ;;  %v136_v23 = vld [vmem:[%s6779_s0 + $0x30] sm:$0xff]  ;;  %v5556_v24 = vpack.c.bf16 %v133_v22, %v132_v21  ;;  %v137_v25 = vld [vmem:[%s6779_s0 + $0x38] sm:$0xff]  ;;  %v4699_v35 = vld [vmem:[%s6780_s3] ss:$0 sm:$0xff] }
  0x1a   :  { %5554 = vmatpush3.bf16.msra.mxu0 %v5553_v17  ;;  %v5562_v26 = vpack.c.bf16 %v137_v25, %v136_v23  ;;  %v4700_v37 = vld [vmem:[%s6781_s4] ss:$0 sm:$0xff]  ;;  %v439_v44 = vld [vmem:[%s6782_s26 + $0x8] sm:$0xff]  ;;  %v440_v49 = vld [vmem:[%s6782_s26 + $0x10] sm:$0xff] }
  0x1b   :  { %5560 = vmatpush3.bf16.msra.mxu1 %v5559_v20  ;;  %5555 = vmatprep.subr.bf16.mxu0 %v5870_v19  ;;  %v438_v42 = vld [vmem:[%s6782_s26] sm:$0xff]  ;;  %v443_v46 = vld [vmem:[%s6782_s26 + $0x28] sm:$0xff]  ;;  %v441_v51 = vld [vmem:[%s6782_s26 + $0x18] sm:$0xff] }
  0x1c   :  { %5561 = vmatprep.subr.bf16.mxu1 %v5870_v19  ;;  %v442_v45 = vld [vmem:[%s6782_s26 + $0x20] sm:$0xff]  ;;  %v5577_v47 = vpack.c.bf16 %v439_v44, %v438_v42  ;;  %v444_v52 = vld [vmem:[%s6782_s26 + $0x30] sm:$0xff]  ;;  %v445_v53 = vld [vmem:[%s6782_s26 + $0x38] sm:$0xff]  ;;  %v5580_v54 = vpack.c.bf16 %v441_v51, %v440_v49 }
  0x1d   :  { %v5583_v48 = vpack.c.bf16 %v443_v46, %v442_v45  ;;  %v5586_v55 = vpack.c.bf16 %v445_v53, %v444_v52  ;;  %v740_v56 = vld [vmem:[%s6783_s2] sm:$0xff]  ;;  %v741_v57 = vld [vmem:[%s6783_s2 + $0x8] sm:$0xff]  ;;  %v742_v62 = vld [vmem:[%s6783_s2 + $0x10] sm:$0xff] }
  0x1e   :  { %5557 = vmatpush3.bf16.msra.mxu0 %v5556_v24  ;;  %v744_v58 = vld [vmem:[%s6783_s2 + $0x20] sm:$0xff]  ;;  %v745_v59 = vld [vmem:[%s6783_s2 + $0x28] sm:$0xff]  ;;  %v5601_v60 = vpack.c.bf16 %v741_v57, %v740_v56  ;;  %v743_v63 = vld [vmem:[%s6783_s2 + $0x18] sm:$0xff] }
  0x1f   :  { %5563 = vmatpush3.bf16.msra.mxu1 %v5562_v26  ;;  %5564 = vmatprep.subr.bf16.mxu0 %v5870_v19  ;;  %v5607_v61 = vpack.c.bf16 %v745_v59, %v744_v58  ;;  %v5604_v2 = vpack.c.bf16 %v743_v63, %v742_v62  ;;  %v4701_v15 = vld [vmem:[%s6785_s1] ss:$0 sm:$0xff]  ;;  %v4702_v22 = vld [vmem:[%s6785_s1 + $0x1] ss:$0 sm:$0xff]  ;;  %v6229_v63 = vld [vmem:[%s6786_s5 + $0x3] ss:$0 sm:$0xff] }
  0x20   :  { %5570 = vmatprep.subr.bf16.mxu1 %v5870_v19  ;;  %v6216_v51 = vld [vmem:[%s6786_s5] ss:$0 sm:$0xff]  ;;  %v6222_v56 = vld [vmem:[%s6786_s5 + $0x1] ss:$0 sm:$0xff] }
  0x9f   :  { %v85_v4 = vpop.xlane.xlu0 %84 }
  0xa0   :  { %v90_v5 = vmul.f32 0.03125, %v85_v4 }
  0xa2   :  { %v92_v6 = vsub.f32 %v78_v0, %v90_v5  ;;  %v746_v0 = vld [vmem:[%s6783_s2 + $0x30] sm:$0xff] }
  0xa3   :  { %v88_v7 = vpop.xlane.xlu0 %87 }
  0xa4   :  { %v91_v8 = vmul.f32 0.03125, %v88_v7  ;;  %v94_v9 = vmul.f32 %v92_v6, %v92_v6 }
  0xa6   :  { %v93_v10 = vsub.f32 %v79_v1, %v91_v8  ;;  %v96_v11 = vsel %vm82_vm0, %v94_v9, 0.0  ;;  %v747_v1 = vld [vmem:[%s6783_s2 + $0x38] sm:$0xff] }
  0xa7   :  { %97 = vadd.xlane.f32.xlu1 %v96_v11  ;;  %v5610_v3 = vpack.c.bf16 %v747_v1, %v746_v0  ;;  %v6234_v0 = vld [vmem:[%s6786_s5 + $0x2] ss:$0 sm:$0xff] }
  0xa8   :  { %v95_v12 = vmul.f32 %v93_v10, %v93_v10 }
  0xaa   :  { %v99_v13 = vsel %vm82_vm0, %v95_v12, 0.0  ;;  %v4707_v12 = vld [vmem:[%s6784_s25] ss:$0 sm:$0xff] }
  0xab   :  { %100 = vadd.xlane.f32.xlu1 %v99_v13 }
 0x134   :  { %v98_v28 = vpop.xlane.xlu1 %97 }
 0x135   :  { %v102_v29 = vmul.f32 0.03125, %v98_v28 }
 0x137   :  { %v104_v30 = vadd.f32 1e-12, %v102_v29 }
 0x138   :  { %v101_v31 = vpop.xlane.xlu1 %100 }
 0x139   :  { %5784 = vrsqrt.f32 %v104_v30  ;;  %v103_v32 = vmul.f32 0.03125, %v101_v31 }
 0x13b   :  { %v105_v33 = vadd.f32 1e-12, %v103_v32 }
 0x13d   :  { %5786 = vrsqrt.f32 %v105_v33 }
 0x143   :  { %v5785_v34 = vpop.eup %5784 }
 0x144   :  { %v108_v36 = vmul.f32 %v5785_v34, %v92_v6  ;;  %v4713_v34 = vld [vmem:[%s6746_s9] ss:$0 sm:$0xff] }
 0x146   :  { %v116_v38 = vmul.f32 %v4699_v35, %v108_v36 }
 0x147   :  { %v5787_v39 = vpop.eup %5786 }
 0x148   :  { %v6049_v40 = vadd.f32 %v4700_v37, %v116_v38  ;;  %v109_v41 = vmul.f32 %v5787_v39, %v93_v10 }
 0x14a   :  { %5079 = vmatmul.mubr.msk.f32.vlgmr.msra.gmra.mrb[0].mxu0 %vm82_vm0, %v6049_v40  ;;  %5090 = vmatmul.mubr.msk.f32.vlgmr.msra.gmra.mrb[0].mxu1 %vm82_vm0, %v6049_v40  ;;  %v117_v43 = vmul.f32 %v4699_v35, %v109_v41  ;;  %v4714_v35 = vld [vmem:[%s6746_s9 + $0x1] ss:$0 sm:$0xff] }
 0x14b   :  { %5566 = vmatpush3.bf16.msra.mxu0 %v5553_v17  ;;  %5572 = vmatpush3.bf16.msra.mxu1 %v5559_v20  ;;  %v4708_v20 = vld [vmem:[%s6784_s25 + $0x1] ss:$0 sm:$0xff] }
 0x14c   :  { %5567 = vmatprep.subr.bf16.mxu0 %v5870_v19  ;;  %5573 = vmatprep.subr.bf16.mxu1 %v5870_v19  ;;  %v6076_v50 = vadd.f32 %v4700_v37, %v117_v43 }
 0x14d   :  { %5100 = vmatprep.mubr.msk.f32.mxu0 %vm5871_vm1, %v5872_v27  ;;  %5111 = vmatprep.mubr.msk.f32.mxu1 %vm5871_vm1, %v5872_v27 }
 0x14f   :  { %5569 = vmatpush3.bf16.msra.mxu0 %v5556_v24  ;;  %5575 = vmatpush3.bf16.msra.mxu1 %v5562_v26 }
 0x150   :  { %5576 = vmatprep.subr.bf16.mxu0 %v5870_v19  ;;  %5582 = vmatprep.subr.bf16.mxu1 %v5870_v19 }
 0x152   :  { %5101 = vmatmul.mubr.msk.f32.vlgmr.msra.gmra.mrb[2].mxu0 %vm82_vm0, %v6076_v50  ;;  %5112 = vmatmul.mubr.msk.f32.vlgmr.msra.gmra.mrb[2].mxu1 %vm82_vm0, %v6076_v50 }
 0x153   :  { %5578 = vmatpush3.bf16.msra.mxu0 %v5577_v47  ;;  %5584 = vmatpush3.bf16.msra.mxu1 %v5583_v48 }
 0x154   :  { %5579 = vmatprep.subr.bf16.mxu0 %v5870_v19  ;;  %5585 = vmatprep.subr.bf16.mxu1 %v5870_v19 }
 0x155   :  { %5122 = vmatprep.mubr.msk.f32.mxu0 %vm5871_vm1, %v5872_v27  ;;  %5133 = vmatprep.mubr.msk.f32.mxu1 %vm5871_vm1, %v5872_v27 }
 0x157   :  { %5581 = vmatpush3.bf16.msra.mxu0 %v5580_v54  ;;  %5587 = vmatpush3.bf16.msra.mxu1 %v5586_v55 }
 0x158   :  { %5588 = vmatprep.subr.bf16.mxu0 %v5870_v19  ;;  %5594 = vmatprep.subr.bf16.mxu1 %v5870_v19 }
 0x15a   :  { %5123 = vmatmul.mubr.msk.f32.vlgmr.msra.gmra.mrb[4].mxu0 %vm82_vm0, %v6049_v40  ;;  %5134 = vmatmul.mubr.msk.f32.vlgmr.msra.gmra.mrb[4].mxu1 %vm82_vm0, %v6049_v40 }
 0x15b   :  { %5590 = vmatpush3.bf16.msra.mxu0 %v5577_v47  ;;  %5596 = vmatpush3.bf16.msra.mxu1 %v5583_v48 }
 0x15c   :  { %5591 = vmatprep.subr.bf16.mxu0 %v5870_v19  ;;  %5597 = vmatprep.subr.bf16.mxu1 %v5870_v19 }
 0x15d   :  { %5144 = vmatprep.mubr.msk.f32.mxu0 %vm5871_vm1, %v5872_v27  ;;  %5155 = vmatprep.mubr.msk.f32.mxu1 %vm5871_vm1, %v5872_v27 }
 0x15f   :  { %5593 = vmatpush3.bf16.msra.mxu0 %v5580_v54  ;;  %5599 = vmatpush3.bf16.msra.mxu1 %v5586_v55 }
 0x160   :  { %5600 = vmatprep.subr.bf16.mxu0 %v5870_v19  ;;  %5606 = vmatprep.subr.bf16.mxu1 %v5870_v19 }
 0x162   :  { %5145 = vmatmul.mubr.msk.f32.vlgmr.msra.gmra.mrb[6].mxu0 %vm82_vm0, %v6076_v50  ;;  %5156 = vmatmul.mubr.msk.f32.vlgmr.msra.gmra.mrb[6].mxu1 %vm82_vm0, %v6076_v50 }
 0x163   :  { %5602 = vmatpush3.bf16.msra.mxu0 %v5601_v60  ;;  %5608 = vmatpush3.bf16.msra.mxu1 %v5607_v61 }
 0x164   :  { %5603 = vmatprep.subr.bf16.mxu0 %v5870_v19  ;;  %5609 = vmatprep.subr.bf16.mxu1 %v5870_v19 }
 0x165   :  { %5166 = vmatprep.mubr.msk.f32.mxu0 %vm5871_vm1, %v5872_v27  ;;  %5177 = vmatprep.mubr.msk.f32.mxu1 %vm5871_vm1, %v5872_v27 }
 0x167   :  { %5605 = vmatpush3.bf16.msra.mxu0 %v5604_v2  ;;  %5611 = vmatpush3.bf16.msra.mxu1 %v5610_v3 }
 0x168   :  { %5612 = vmatprep.subr.bf16.mxu0 %v5870_v19  ;;  %5618 = vmatprep.subr.bf16.mxu1 %v5870_v19 }
 0x16a   :  { %5167 = vmatmul.mubr.msk.f32.vlgmr.msra.gmra.mrb[8].mxu0 %vm82_vm0, %v6049_v40  ;;  %5178 = vmatmul.mubr.msk.f32.vlgmr.msra.gmra.mrb[8].mxu1 %vm82_vm0, %v6049_v40 }
 0x16b   :  { %5614 = vmatpush3.bf16.msra.mxu0 %v5601_v60  ;;  %5620 = vmatpush3.bf16.msra.mxu1 %v5607_v61 }
 0x16c   :  { %5615 = vmatprep.subr.bf16.mxu0 %v5870_v19  ;;  %5621 = vmatprep.subr.bf16.mxu1 %v5870_v19 }
 0x16d   :  { %5188 = vmatprep.mubr.msk.f32.mxu0 %vm5871_vm1, %v5872_v27  ;;  %5199 = vmatprep.mubr.msk.f32.mxu1 %vm5871_vm1, %v5872_v27 }
 0x16f   :  { %5617 = vmatpush3.bf16.msra.mxu0 %v5604_v2  ;;  %5623 = vmatpush3.bf16.msra.mxu1 %v5610_v3 }
 0x170   :  { %5202 = vmatprep.subr.mxu1 %v5872_v27  ;;  %5212 = vmatprep.subr.mxu0 %v5872_v27 }
 0x172   :  { %5189 = vmatmul.mubr.msk.f32.vlgmr.msra.gmra.mrb[10].mxu0 %vm82_vm0, %v6076_v50  ;;  %5200 = vmatmul.mubr.msk.f32.vlgmr.msra.gmra.mrb[10].mxu1 %vm82_vm0, %v6076_v50 }
 0x173   :  { %5204 = vmatprep.mubr.msk.f32.mxu1 %vm5871_vm1, %v5872_v27  ;;  %5214 = vmatprep.mubr.msk.f32.mxu0 %vm5871_vm1, %v5872_v27 }
 0x21d   :  { %v221_v4 = vpop.f32.mrb[0].mxu0  ;;  %v291_v5 = vpop.f32.mrb[0].mxu1 }
 0x21e   :  { %v5080_v6 = vpop.f32.mrb[1].mxu0  ;;  %v5091_v7 = vpop.f32.mrb[1].mxu1  ;;  %v222_v21 = vadd.f32 %v4701_v15, %v221_v4  ;;  %v292_v24 = vadd.f32 %v4702_v22, %v291_v5 }
 0x225   :  { %v364_v8 = vpop.f32.mrb[2].mxu0  ;;  %v434_v9 = vpop.f32.mrb[2].mxu1 }
 0x226   :  { %v5102_v10 = vpop.f32.mrb[3].mxu0  ;;  %v5113_v11 = vpop.f32.mrb[3].mxu1  ;;  %v365_v32 = vadd.f32 %v4701_v15, %v364_v8  ;;  %v435_v33 = vadd.f32 %v4702_v22, %v434_v9 }
 0x22d   :  { %v526_v13 = vpop.f32.mrb[4].mxu0  ;;  %v596_v14 = vpop.f32.mrb[4].mxu1 }
 0x22e   :  { %v527_v16 = vadd.f32 %v4707_v12, %v526_v13  ;;  %v5124_v17 = vpop.f32.mrb[5].mxu0  ;;  %v5135_v18 = vpop.f32.mrb[5].mxu1  ;;  %v597_v23 = vadd.f32 %v4708_v20, %v596_v14 }
 0x230   :  { %5203 = vmatpush3.xpose.msk.msra.mxu1 %vm1042_vm2, %v527_v16 }
 0x231   :  { %5207 = vmatprep.subr.mxu1 %v5872_v27 }
 0x233   :  { %5205 = vmatmul.mubr.msk.f32.vlgmr.msra.gmra.mrb[12].mxu1 %vm1042_vm2, %v222_v21 }
 0x234   :  { %5208 = vmatpush3.xpose.msk.msra.mxu1 %vm1042_vm2, %v597_v23  ;;  %5209 = vmatprep.mubr.msk.f32.mxu1 %vm5871_vm1, %v5872_v27 }
 0x235   :  { %v666_v25 = vpop.f32.mrb[6].mxu0  ;;  %v736_v26 = vpop.f32.mrb[6].mxu1  ;;  %5217 = vmatprep.subr.mxu1 %v5872_v27 }
 0x236   :  { %v667_v28 = vadd.f32 %v4707_v12, %v666_v25  ;;  %v737_v29 = vadd.f32 %v4708_v20, %v736_v26  ;;  %v5146_v30 = vpop.f32.mrb[7].mxu0  ;;  %v5157_v31 = vpop.f32.mrb[7].mxu1 }
 0x237   :  { %5210 = vmatmul.mubr.msk.f32.vlgmr.msra.gmra.mrb[14].mxu1 %vm1042_vm2, %v292_v24 }
 0x238   :  { %5213 = vmatpush3.xpose.msk.msra.mxu0 %vm1042_vm2, %v667_v28  ;;  %5218 = vmatpush3.xpose.msk.msra.mxu1 %vm1042_vm2, %v737_v29 }
 0x239   :  { %5219 = vmatprep.mubr.msk.f32.mxu1 %vm5871_vm1, %v5872_v27  ;;  %5222 = vmatprep.subr.mxu0 %v5872_v27 }
 0x23a   :  { %5227 = vmatprep.subr.mxu1 %v5872_v27 }
 0x23b   :  { %5215 = vmatmul.mubr.msk.f32.vlgmr.msra.gmra.mrb[12].mxu0 %vm1042_vm2, %v365_v32  ;;  %5220 = vmatmul.mubr.msk.f32.vlgmr.msra.gmra.mrb[16].mxu1 %vm1042_vm2, %v435_v33 }
 0x23c   :  { %5224 = vmatprep.mubr.msk.f32.mxu0 %vm5871_vm1, %v5872_v27  ;;  %5229 = vmatprep.mubr.msk.f32.mxu1 %vm5871_vm1, %v5872_v27 }
 0x23d   :  { %v828_v36 = vpop.f32.mrb[8].mxu0  ;;  %v898_v37 = vpop.f32.mrb[8].mxu1 }
 0x23e   :  { %v829_v38 = vadd.f32 %v4713_v34, %v828_v36  ;;  %v899_v39 = vadd.f32 %v4714_v35, %v898_v37  ;;  %v5168_v41 = vpop.f32.mrb[9].mxu0  ;;  %v5179_v42 = vpop.f32.mrb[9].mxu1 }
 0x23f   :  { %v1716_v41 = vld [vmem:[%s6747_s10] sm:$0xff]  ;;  %v1717_v42 = vld [vmem:[%s6747_s10 + $0x8] sm:$0xff] }
 0x240   :  { %5223 = vmatpush3.msra.mxu0 %v829_v38  ;;  %5228 = vmatpush3.msra.mxu1 %v899_v39 }
 0x241   :  { %5232 = vmatprep.subr.mxu0 %v5872_v27  ;;  %5237 = vmatprep.subr.mxu1 %v5872_v27 }
 0x245   :  { %v968_v43 = vpop.f32.mrb[10].mxu0  ;;  %v1038_v44 = vpop.f32.mrb[10].mxu1 }
 0x246   :  { %v6209_v45 = vadd.f32 %v4713_v34, %v968_v43  ;;  %v6211_v46 = vadd.f32 %v4714_v35, %v1038_v44  ;;  %v5190_v47 = vpop.f32.mrb[11].mxu0  ;;  %v5201_v48 = vpop.f32.mrb[11].mxu1 }
 0x247   :  { %v5625_v47 = vpack.c.bf16 %v1717_v42, %v1716_v41 }
 0x306   :  { %v1115_v49 = vpop.f32.mrb[12].mxu1 }
 0x307   :  { %v1347_v52 = vmul.f32 0.25, %v1115_v49  ;;  %v5206_v53 = vpop.f32.mrb[13].mxu1  ;;  %v1719_v49 = vld [vmem:[%s6747_s10 + $0x18] sm:$0xff] }
 0x309   :  { %v1375_v54 = vadd.f32 %v6216_v51, %v1347_v52 }
 0x30a   :  { %v1191_v55 = vpop.f32.mrb[14].mxu1 }
 0x30b   :  { %v1348_v57 = vmul.f32 0.25, %v1191_v55  ;;  %v5211_v58 = vpop.f32.mrb[15].mxu1  ;;  %v1380_v59 = vsel %vm1379_vm3, %v1375_v54, -inf }
 0x30c   :  { %1381 = vmax.xlane.f32.xlu0 %v1380_v59 }
 0x30d   :  { %v1376_v60 = vadd.f32 %v6222_v56, %v1348_v57 }
 0x30e   :  { %v1267_v61 = vpop.f32.mrb[12].mxu0  ;;  %v1343_v62 = vpop.f32.mrb[16].mxu1 }
 0x30f   :  { %v1349_v1 = vmul.f32 0.25, %v1267_v61  ;;  %v1350_v2 = vmul.f32 0.25, %v1343_v62  ;;  %v5216_v3 = vpop.f32.mrb[13].mxu0  ;;  %v5221_v4 = vpop.f32.mrb[17].mxu1  ;;  %v1383_v5 = vsel %vm1379_vm3, %v1376_v60, -inf }
 0x310   :  { %1384 = vmax.xlane.f32.xlu1 %v1383_v5  ;;  %v4739_v5 = vld [vmem:[%s6748_s11] ss:$0 sm:$0xff] }
 0x311   :  { %v1378_v6 = vadd.f32 %v6229_v63, %v1350_v2  ;;  %v1377_v7 = vadd.f32 %v6234_v0, %v1349_v1 }
 0x313   :  { %v1389_v8 = vsel %vm1379_vm3, %v1378_v6, -inf  ;;  %v1386_v9 = vsel %vm1379_vm3, %v1377_v7, -inf }
 0x314   :  { %1390 = vmax.xlane.f32.xlu1 %v1389_v8  ;;  %1387 = vmax.xlane.f32.xlu0 %v1386_v9 }
 0x399   :  { %v1382_v10 = vpop.xlane.xlu0 %1381 }
 0x39a   :  { %v1392_v11 = vsub.f32 %v1375_v54, %v1382_v10 }
 0x39c   :  { %v1396_v12 = vmul.f32 1.442695, %v1392_v11 }
 0x39d   :  { %v1385_v13 = vpop.xlane.xlu1 %1384 }
 0x39e   :  { %5788 = vpow2.f32 %v1396_v12  ;;  %v1393_v14 = vsub.f32 %v1376_v60, %v1385_v13 }
 0x3a0   :  { %v1398_v15 = vmul.f32 1.442695, %v1393_v14 }
 0x3a1   :  { %v1391_v16 = vpop.xlane.xlu1 %1390  ;;  %v1388_v17 = vpop.xlane.xlu0 %1387 }
 0x3a2   :  { %5790 = vpow2.f32 %v1398_v15  ;;  %v1395_v18 = vsub.f32 %v1378_v6, %v1391_v16  ;;  %v1394_v20 = vsub.f32 %v1377_v7, %v1388_v17 }
 0x3a4   :  { %v1402_v21 = vmul.f32 1.442695, %v1395_v18  ;;  %v1400_v22 = vmul.f32 1.442695, %v1394_v20 }
 0x3a6   :  { %5792 = vpow2.f32 %v1402_v21 }
 0x3a7   :  { %5794 = vpow2.f32 %v1400_v22 }
 0x3a8   :  { %v5789_v23 = vpop.eup %5788 }
 0x3a9   :  { %v1404_v24 = vsel %vm1379_vm3, %v5789_v23, 0.0 }
 0x3aa   :  { %1405 = vadd.xlane.f32.xlu0 %v1404_v24 }
 0x3ac   :  { %v5791_v25 = vpop.eup %5790 }
 0x3ad   :  { %v1407_v26 = vsel %vm1379_vm3, %v5791_v25, 0.0 }
 0x3ae   :  { %1408 = vadd.xlane.f32.xlu1 %v1407_v26 }
 0x3b0   :  { %v5793_v28 = vpop.eup %5792 }
 0x3b1   :  { %v5795_v29 = vpop.eup %5794  ;;  %v1413_v30 = vsel %vm1379_vm3, %v5793_v28, 0.0 }
 0x3b2   :  { %1414 = vadd.xlane.f32.xlu1 %v1413_v30  ;;  %v1410_v31 = vsel %vm1379_vm3, %v5795_v29, 0.0 }
 0x3b3   :  { %1411 = vadd.xlane.f32.xlu0 %v1410_v31 }
 0x437   :  { %v1406_v32 = vpop.xlane.xlu0 %1405 }
 0x438   :  { %5796 = vrcp.f32 %v1406_v32  ;;  %v2074_v32 = vld [vmem:[%s6751_s14 + $0x8] sm:$0xff] }
 0x43b   :  { %v1409_v33 = vpop.xlane.xlu1 %1408 }
 0x43c   :  { %5798 = vrcp.f32 %v1409_v33 }
 0x43f   :  { %v1415_v34 = vpop.xlane.xlu1 %1414 }
 0x440   :  { %5800 = vrcp.f32 %v1415_v34  ;;  %v1412_v35 = vpop.xlane.xlu0 %1411  ;;  %v2075_v34 = vld [vmem:[%s6751_s14 + $0x10] sm:$0xff] }
 0x441   :  { %5802 = vrcp.f32 %v1412_v35  ;;  %v2076_v35 = vld [vmem:[%s6751_s14 + $0x18] sm:$0xff] }
 0x442   :  { %v5797_v36 = vpop.eup %5796 }
 0x443   :  { %v1420_v37 = vmul.f32 %v5797_v36, %v5789_v23  ;;  %v5640_v36 = vpack.c.bf16 %v2076_v35, %v2075_v34 }
 0x445   :  { %5225 = vmatmul.mubr.msk.f32.vlgmr.msra.gmra.mrb[14].mxu0 %vm1379_vm3, %v1420_v37 }
 0x446   :  { %v5799_v38 = vpop.eup %5798  ;;  %5233 = vmatpush3.msra.mxu0 %v6209_v45  ;;  %5234 = vmatprep.mubr.msk.f32.mxu0 %vm5871_vm1, %v5872_v27 }
 0x447   :  { %v1421_v39 = vmul.f32 %v5799_v38, %v5791_v25  ;;  %5624 = vmatprep.subr.bf16.mxu0 %v5870_v19 }
 0x449   :  { %5230 = vmatmul.mubr.msk.f32.vlgmr.msra.gmra.mrb[18].mxu1 %vm1379_vm3, %v1421_v39 }
 0x44a   :  { %v5801_v43 = vpop.eup %5800  ;;  %5238 = vmatpush3.msra.mxu1 %v6211_v46  ;;  %5239 = vmatprep.mubr.msk.f32.mxu1 %vm5871_vm1, %v5872_v27  ;;  %v1718_v46 = vld [vmem:[%s6747_s10 + $0x10] sm:$0xff] }
 0x44b   :  { %v5803_v44 = vpop.eup %5802  ;;  %v1423_v45 = vmul.f32 %v5801_v43, %v5793_v28  ;;  %5627 = vmatprep.subr.bf16.mxu1 %v5870_v19  ;;  %v5628_v52 = vpack.c.bf16 %v1719_v49, %v1718_v46 }
 0x44c   :  { %v1422_v48 = vmul.f32 %v5803_v44, %v5795_v29 }
 0x44d   :  { %5240 = vmatmul.mubr.msk.f32.vlgmr.msra.gmra.mrb[20].mxu1 %vm1379_vm3, %v1423_v45  ;;  %v4740_v45 = vld [vmem:[%s6749_s12] ss:$0 sm:$0xff] }
 0x44e   :  { %5235 = vmatmul.mubr.msk.f32.vlgmr.msra.gmra.mrb[16].mxu0 %vm1379_vm3, %v1422_v48  ;;  %5253 = vmatprep.mubr.msk.f32.mxu1 %vm5871_vm1, %v5872_v27  ;;  %v4741_v48 = vld [vmem:[%s6750_s13] ss:$0 sm:$0xff] }
 0x44f   :  { %5626 = vmatpush3.bf16.msra.mxu0 %v5625_v47  ;;  %5246 = vmatprep.mubr.msk.f32.mxu0 %vm5871_vm1, %v5872_v27 }
 0x450   :  { %5630 = vmatprep.subr.bf16.mxu0 %v5870_v19  ;;  %5629 = vmatpush3.bf16.msra.mxu1 %v5628_v52 }
 0x451   :  { %5633 = vmatprep.subr.bf16.mxu1 %v5870_v19 }
 0x518   :  { %v1493_v53 = vpop.f32.mrb[14].mxu0 }
 0x519   :  { %v5226_v54 = vpop.f32.mrb[15].mxu0  ;;  %5247 = vmatmul.mubr.msk.f32.vlgmr.msra.gmra.mrb[18].mxu0 %vm1042_vm2, %v1493_v53 }
 0x51a   :  { %5632 = vmatpush3.bf16.msra.mxu0 %v5625_v47  ;;  %5260 = vmatprep.mubr.msk.f32.mxu0 %vm5871_vm1, %v5872_v27 }
 0x51c   :  { %v1566_v55 = vpop.f32.mrb[18].mxu1 }
 0x51d   :  { %v5231_v57 = vpop.f32.mrb[19].mxu1  ;;  %5254 = vmatmul.mubr.msk.f32.vlgmr.msra.gmra.mrb[22].mxu1 %vm1042_vm2, %v1566_v55 }
 0x51e   :  { %5635 = vmatpush3.bf16.msra.mxu1 %v5628_v52  ;;  %5267 = vmatprep.mubr.msk.f32.mxu1 %vm5871_vm1, %v5872_v27  ;;  %v2183_v57 = vld [vmem:[%s6753_s16] sm:$0xff] }
 0x520   :  { %v1712_v58 = vpop.f32.mrb[20].mxu1 }
 0x521   :  { %v1639_v59 = vpop.f32.mrb[16].mxu0  ;;  %v5241_v60 = vpop.f32.mrb[21].mxu1  ;;  %5268 = vmatmul.mubr.msk.f32.vlgmr.msra.gmra.mrb[24].mxu1 %vm1042_vm2, %v1712_v58  ;;  %v2184_v58 = vld [vmem:[%s6753_s16 + $0x8] sm:$0xff] }
 0x522   :  { %v5236_v61 = vpop.f32.mrb[17].mxu0  ;;  %5261 = vmatmul.mubr.msk.f32.vlgmr.msra.gmra.mrb[20].mxu0 %vm1042_vm2, %v1639_v59  ;;  %v5644_v59 = vpack.c.bf16 %v2184_v58, %v2183_v57  ;;  %v2185_v60 = vld [vmem:[%s6753_s16 + $0x10] sm:$0xff]  ;;  %v4753_v57 = vld [vmem:[%s6779_s0 + $0x58] sm:$0xff] }
 0x523   :  { %v2186_v61 = vld [vmem:[%s6753_s16 + $0x18] sm:$0xff] }
 0x524   :  { %5645 = vmatprep.subr.bf16.mxu1 %v5644_v59 }
 0x525   :  { %5647 = vmatpush3.bf16.msra.mxu1 %v5644_v59 }
 0x5ec   :  { %v1789_v62 = vpop.f32.mrb[18].mxu0 }
 0x5ed   :  { %v5248_v1 = vpop.f32.mrb[19].mxu0  ;;  %v2012_v3 = vsel %vm82_vm0, %v1789_v62, 0.0  ;;  %v2187_v62 = vld [vmem:[%s6753_s16 + $0x20] sm:$0xff] }
 0x5ee   :  { %v5648_v1 = vpack.c.bf16 %v2186_v61, %v2185_v60 }
 0x5f0   :  { %v1862_v2 = vpop.f32.mrb[22].mxu1  ;;  %5649 = vmatprep.subr.bf16.mxu1 %v5648_v1 }
 0x5f1   :  { %v2013_v4 = vsel %vm82_vm0, %v1862_v2, 0.0  ;;  %v5255_v6 = vpop.f32.mrb[23].mxu1  ;;  %v2188_v2 = vld [vmem:[%s6753_s16 + $0x28] sm:$0xff]  ;;  %5651 = vmatpush3.bf16.msra.mxu1 %v5648_v1 }
 0x5f2   :  { %v2014_v7 = vadd.f32 %v2013_v4, %v2012_v3  ;;  %v5652_v3 = vpack.c.bf16 %v2188_v2, %v2187_v62  ;;  %v2189_v4 = vld [vmem:[%s6753_s16 + $0x30] sm:$0xff] }
 0x5f4   :  { %v2025_v8 = vadd.f32 %v4739_v5, %v2014_v7  ;;  %v2008_v9 = vpop.f32.mrb[24].mxu1  ;;  %5653 = vmatprep.subr.bf16.mxu1 %v5652_v3  ;;  %v4742_v7 = vld [vmem:[%s6752_s15] ss:$0 sm:$0xff] }
 0x5f5   :  { %v1935_v10 = vpop.f32.mrb[20].mxu0  ;;  %v2016_v11 = vsel %vm82_vm0, %v2008_v9, 0.0  ;;  %v5269_v12 = vpop.f32.mrb[25].mxu1  ;;  %5655 = vmatpush3.bf16.msra.mxu1 %v5652_v3 }
 0x5f6   :  { %v2015_v13 = vsel %vm82_vm0, %v1935_v10, 0.0  ;;  %v5262_v14 = vpop.f32.mrb[21].mxu0  ;;  %v2027_v15 = vadd.f32 %v2025_v8, %v6049_v40 }
 0x5f7   :  { %v2017_v16 = vadd.f32 %v2016_v11, %v2015_v13 }
 0x5f8   :  { %v2031_v17 = vsel %vm82_vm0, %v2027_v15, 0.0 }
 0x5f9   :  { %v2026_v18 = vadd.f32 %v4739_v5, %v2017_v16  ;;  %2032 = vadd.xlane.f32.xlu0 %v2031_v17  ;;  %v2190_v5 = vld [vmem:[%s6753_s16 + $0x38] sm:$0xff] }
 0x5fa   :  { %v5656_v6 = vpack.c.bf16 %v2190_v5, %v2189_v4  ;;  %v4748_v4 = vld [vmem:[%s6755_s18] ss:$0 sm:$0xff] }
 0x5fb   :  { %v2028_v20 = vadd.f32 %v2026_v18, %v6076_v50  ;;  %v2073_v50 = vld [vmem:[%s6751_s14] sm:$0xff] }
 0x5fc   :  { %v5636_v33 = vpack.c.bf16 %v2074_v32, %v2073_v50  ;;  %5657 = vmatprep.subr.bf16.mxu1 %v5656_v6 }
 0x5fd   :  { %v2034_v21 = vsel %vm82_vm0, %v2028_v20, 0.0  ;;  %5659 = vmatpush3.bf16.msra.mxu1 %v5656_v6 }
 0x5fe   :  { %2035 = vadd.xlane.f32.xlu1 %v2034_v21  ;;  %5637 = vmatprep.subr.bf16.mxu0 %v5636_v33 }
 0x5ff   :  { %5639 = vmatpush3.bf16.msra.mxu0 %v5636_v33  ;;  %5672 = vmatprep.subr.bf16.mxu1 %v5870_v19 }
 0x600   :  { %5641 = vmatprep.subr.bf16.mxu0 %v5640_v36 }
 0x603   :  { %5643 = vmatpush3.bf16.msra.mxu0 %v5640_v36 }
 0x604   :  { %5660 = vmatprep.subr.bf16.mxu0 %v5870_v19 }
 0x686   :  { %v2033_v22 = vpop.xlane.xlu0 %2032 }
 0x687   :  { %v2037_v23 = vmul.f32 0.03125, %v2033_v22 }
 0x689   :  { %v2039_v24 = vsub.f32 %v2027_v15, %v2037_v23 }
 0x68b   :  { %v2036_v25 = vpop.xlane.xlu1 %2035  ;;  %v2041_v26 = vmul.f32 %v2039_v24, %v2039_v24 }
 0x68c   :  { %v2038_v28 = vmul.f32 0.03125, %v2036_v25 }
 0x68d   :  { %v2043_v29 = vsel %vm82_vm0, %v2041_v26, 0.0 }
 0x68e   :  { %v2040_v30 = vsub.f32 %v2028_v20, %v2038_v28  ;;  %2044 = vadd.xlane.f32.xlu0 %v2043_v29 }
 0x690   :  { %v2042_v40 = vmul.f32 %v2040_v30, %v2040_v30 }
 0x692   :  { %v2046_v31 = vsel %vm82_vm0, %v2042_v40, 0.0 }
 0x693   :  { %2047 = vadd.xlane.f32.xlu1 %v2046_v31  ;;  %v4745_v31 = vld [vmem:[%s6754_s17] ss:$0 sm:$0xff] }
 0x71b   :  { %v2045_v37 = vpop.xlane.xlu0 %2044 }
 0x71c   :  { %v2049_v38 = vmul.f32 0.03125, %v2045_v37 }
 0x71e   :  { %v2051_v39 = vadd.f32 1e-12, %v2049_v38 }
 0x720   :  { %5804 = vrsqrt.f32 %v2051_v39  ;;  %v2048_v41 = vpop.xlane.xlu1 %2047 }
 0x721   :  { %v2050_v42 = vmul.f32 0.03125, %v2048_v41 }
 0x723   :  { %v2052_v43 = vadd.f32 1e-12, %v2050_v42 }
 0x725   :  { %5806 = vrsqrt.f32 %v2052_v43 }
 0x72a   :  { %v5805_v44 = vpop.eup %5804 }
 0x72b   :  { %v2055_v47 = vmul.f32 %v5805_v44, %v2039_v24 }
 0x72d   :  { %v2063_v46 = vmul.f32 %v4740_v45, %v2055_v47 }
 0x72f   :  { %v5807_v49 = vpop.eup %5806  ;;  %v6315_v52 = vadd.f32 %v4741_v48, %v2063_v46 }
 0x730   :  { %v2056_v53 = vmul.f32 %v5807_v49, %v2040_v30 }
 0x731   :  { %5278 = vmatprep.mubr.msk.f32.mxu0 %vm82_vm0, %v6315_v52 }
 0x732   :  { %v2064_v54 = vmul.f32 %v4740_v45, %v2056_v53  ;;  %v4751_v53 = vld [vmem:[%s6779_s0 + $0x48] sm:$0xff] }
 0x734   :  { %v2072_v55 = vadd.f32 %v4741_v48, %v2064_v54 }
 0x736   :  { %5279 = vmatmul.mubr.msk.f32.vlgmr.msra.gmra.mrb[22].mxu0 %vm82_vm0, %v2072_v55 }
 0x737   :  { %5308 = vmatprep.mubr.msk.f32.mxu0 %vm5871_vm1, %v5872_v27 }
 0x809   :  { %v5280_v8 = vpop.f32.mrb[22].mxu0 }
 0x80a   :  { %v2162_v9 = vadd.f32 %v5280_v8, %v4742_v7  ;;  %v2156_v10 = vpop.f32.mrb[23].mxu0  ;;  %v4767_v8 = vld [vmem:[%s6782_s26 + $0x48] sm:$0xff] }
 0x80b   :  { %v2157_v11 = vadd.f32 %v4742_v7, %v2156_v10  ;;  %v4766_v7 = vld [vmem:[%s6782_s26 + $0x40] sm:$0xff] }
 0x80c   :  { %v2168_v12 = vmul.f32 0.044715, %v2162_v9  ;;  %v2166_v29 = vmul.f32 0.5, %v2162_v9 }
 0x80d   :  { %v2167_v13 = vmul.f32 0.044715, %v2157_v11  ;;  %v2165_v26 = vmul.f32 0.5, %v2157_v11 }
 0x80e   :  { %v2170_v14 = vmul.f32 %v2168_v12, %v2162_v9  ;;  %v4755_v12 = vld [vmem:[%s6779_s0 + $0x68] sm:$0xff] }
 0x80f   :  { %v2169_v15 = vmul.f32 %v2167_v13, %v2157_v11 }
 0x810   :  { %v2172_v16 = vmul.f32 %v2170_v14, %v2162_v9 }
 0x811   :  { %v2171_v17 = vmul.f32 %v2169_v15, %v2157_v11  ;;  %v5685_v15 = vpack.c.bf16 %v4767_v8, %v4766_v7 }
 0x812   :  { %v2174_v18 = vadd.f32 %v2172_v16, %v2162_v9  ;;  %v4749_v9 = vld [vmem:[%s6756_s19] ss:$0 sm:$0xff] }
 0x813   :  { %v2173_v20 = vadd.f32 %v2171_v17, %v2157_v11  ;;  %v4754_v11 = vld [vmem:[%s6779_s0 + $0x60] sm:$0xff] }
 0x814   :  { %v2176_v21 = vmul.f32 0.7978846, %v2174_v18  ;;  %v5667_v17 = vpack.c.bf16 %v4755_v12, %v4754_v11  ;;  %v4768_v18 = vld [vmem:[%s6782_s26 + $0x50] sm:$0xff] }
 0x815   :  { %v2175_v22 = vmul.f32 0.7978846, %v2173_v20  ;;  %v4769_v20 = vld [vmem:[%s6782_s26 + $0x58] sm:$0xff] }
 0x816   :  { %5808 = vtanh.f32 %v2176_v21 }
 0x817   :  { %5810 = vtanh.f32 %v2175_v22  ;;  %v4756_v22 = vld [vmem:[%s6779_s0 + $0x70] sm:$0xff] }
 0x820   :  { %v5809_v23 = vpop.eup %5808 }
 0x821   :  { %v5811_v24 = vpop.eup %5810  ;;  %v2180_v25 = vadd.f32 1.0, %v5809_v23  ;;  %v4757_v23 = vld [vmem:[%s6779_s0 + $0x78] sm:$0xff] }
 0x822   :  { %v2179_v28 = vadd.f32 1.0, %v5811_v24  ;;  %v5688_v24 = vpack.c.bf16 %v4769_v20, %v4768_v18 }
 0x823   :  { %v2182_v40 = vmul.f32 %v2180_v25, %v2166_v29  ;;  %v5670_v25 = vpack.c.bf16 %v4757_v23, %v4756_v22  ;;  %v4770_v29 = vld [vmem:[%s6782_s26 + $0x60] sm:$0xff] }
 0x824   :  { %v2181_v30 = vmul.f32 %v2179_v28, %v2165_v26  ;;  %v4782_v26 = vld [vmem:[%s6783_s2 + $0x40] sm:$0xff]  ;;  %v4783_v28 = vld [vmem:[%s6783_s2 + $0x48] sm:$0xff] }
 0x825   :  { %v4793_v23 = vld [vmem:[%s6746_s9 + $0x3] ss:$0 sm:$0xff] }
 0x826   :  { %5297 = vmatprep.mubr.msk.f32.mxu1 %vm2198_vm4, %v2181_v30  ;;  %v4771_v30 = vld [vmem:[%s6782_s26 + $0x68] sm:$0xff] }
 0x827   :  { %5298 = vmatmul.mubr.msk.f32.vlgmr.msra.gmra.mrb[26].mxu1 %vm2198_vm4, %v2182_v40  ;;  %v5709_v40 = vpack.c.bf16 %v4783_v28, %v4782_v26 }
 0x828   :  { %5330 = vmatprep.mubr.msk.f32.mxu1 %vm5871_vm1, %v5872_v27 }
 0x8fa   :  { %v5299_v50 = vpop.f32.mrb[26].mxu1 }
 0x8fb   :  { %v2277_v32 = vadd.f32 %v5299_v50, %v4745_v31  ;;  %v2271_v33 = vpop.f32.mrb[27].mxu1  ;;  %v4784_v50 = vld [vmem:[%s6783_s2 + $0x50] sm:$0xff] }
 0x8fc   :  { %v2272_v34 = vadd.f32 %v4745_v31, %v2271_v33  ;;  %v5691_v31 = vpack.c.bf16 %v4771_v30, %v4770_v29  ;;  %v4772_v33 = vld [vmem:[%s6782_s26 + $0x70] sm:$0xff] }
 0x8fd   :  { %v2281_v35 = vadd.f32 %v2277_v32, %v2072_v55  ;;  %v4752_v55 = vld [vmem:[%s6779_s0 + $0x50] sm:$0xff]  ;;  %v4785_v32 = vld [vmem:[%s6783_s2 + $0x58] sm:$0xff] }
 0x8fe   :  { %v2280_v36 = vadd.f32 %v2272_v34, %v6315_v52  ;;  %v4750_v52 = vld [vmem:[%s6779_s0 + $0x40] sm:$0xff]  ;;  %v5664_v58 = vpack.c.bf16 %v4753_v57, %v4752_v55  ;;  %v4773_v34 = vld [vmem:[%s6782_s26 + $0x78] sm:$0xff] }
 0x8ff   :  { %v2287_v37 = vsel %vm82_vm0, %v2281_v35, 0.0  ;;  %v5661_v54 = vpack.c.bf16 %v4751_v53, %v4750_v52  ;;  %v4760_v52 = vld [vmem:[%s6785_s1 + $0x2] ss:$0 sm:$0xff] }
 0x900   :  { %2288 = vadd.xlane.f32.xlu1 %v2287_v37  ;;  %v2284_v38 = vsel %vm82_vm0, %v2280_v36, 0.0  ;;  %v4786_v37 = vld [vmem:[%s6783_s2 + $0x60] sm:$0xff] }
 0x901   :  { %2285 = vadd.xlane.f32.xlu0 %v2284_v38  ;;  %5674 = vmatpush3.bf16.msra.mxu1 %v5661_v54  ;;  %v4787_v38 = vld [vmem:[%s6783_s2 + $0x68] sm:$0xff] }
 0x902   :  { %5662 = vmatpush3.bf16.msra.mxu0 %v5661_v54  ;;  %5675 = vmatprep.subr.bf16.mxu1 %v5870_v19 }
 0x903   :  { %5663 = vmatprep.subr.bf16.mxu0 %v5870_v19 }
 0x905   :  { %5677 = vmatpush3.bf16.msra.mxu1 %v5664_v58 }
 0x906   :  { %5665 = vmatpush3.bf16.msra.mxu0 %v5664_v58  ;;  %5684 = vmatprep.subr.bf16.mxu1 %v5870_v19 }
 0x907   :  { %5666 = vmatprep.subr.bf16.mxu0 %v5870_v19 }
 0x98d   :  { %v2289_v39 = vpop.xlane.xlu1 %2288 }
 0x98e   :  { %v2291_v41 = vmul.f32 0.03125, %v2289_v39  ;;  %v2286_v42 = vpop.xlane.xlu0 %2285  ;;  %v5715_v39 = vpack.c.bf16 %v4787_v38, %v4786_v37 }
 0x98f   :  { %v2290_v43 = vmul.f32 0.03125, %v2286_v42  ;;  %v4789_v42 = vld [vmem:[%s6783_s2 + $0x78] sm:$0xff] }
 0x990   :  { %v2293_v44 = vsub.f32 %v2281_v35, %v2291_v41  ;;  %v5712_v35 = vpack.c.bf16 %v4785_v32, %v4784_v50  ;;  %v4788_v41 = vld [vmem:[%s6783_s2 + $0x70] sm:$0xff] }
 0x991   :  { %v2292_v45 = vsub.f32 %v2280_v36, %v2290_v43  ;;  %v5694_v36 = vpack.c.bf16 %v4773_v34, %v4772_v33  ;;  %v5718_v43 = vpack.c.bf16 %v4789_v42, %v4788_v41 }
 0x992   :  { %v2295_v47 = vmul.f32 %v2293_v44, %v2293_v44 }
 0x993   :  { %v2294_v48 = vmul.f32 %v2292_v45, %v2292_v45 }
 0x994   :  { %v2299_v46 = vsel %vm82_vm0, %v2295_v47, 0.0 }
 0x995   :  { %2300 = vadd.xlane.f32.xlu1 %v2299_v46  ;;  %v2296_v49 = vsel %vm82_vm0, %v2294_v48, 0.0  ;;  %v4776_v46 = vld [vmem:[%s6784_s25 + $0x2] ss:$0 sm:$0xff] }
 0x996   :  { %2297 = vadd.xlane.f32.xlu0 %v2296_v49 }
 0xa22   :  { %v2301_v59 = vpop.xlane.xlu1 %2300 }
 0xa23   :  { %v2303_v60 = vmul.f32 0.03125, %v2301_v59  ;;  %v2298_v61 = vpop.xlane.xlu0 %2297 }
 0xa24   :  { %v2302_v62 = vmul.f32 0.03125, %v2298_v61 }
 0xa25   :  { %v2305_v1 = vadd.f32 1e-12, %v2303_v60 }
 0xa26   :  { %v2304_v2 = vadd.f32 1e-12, %v2302_v62 }
 0xa27   :  { %5812 = vrsqrt.f32 %v2305_v1 }
 0xa28   :  { %5814 = vrsqrt.f32 %v2304_v2 }
 0xa31   :  { %v5813_v3 = vpop.eup %5812 }
 0xa32   :  { %v5815_v5 = vpop.eup %5814  ;;  %v2309_v6 = vmul.f32 %v5813_v3, %v2293_v44  ;;  %v4792_v3 = vld [vmem:[%s6746_s9 + $0x2] ss:$0 sm:$0xff] }
 0xa33   :  { %v2308_v10 = vmul.f32 %v5815_v5, %v2292_v45 }
 0xa34   :  { %v2317_v13 = vmul.f32 %v4748_v4, %v2309_v6 }
 0xa35   :  { %v2316_v14 = vmul.f32 %v4748_v4, %v2308_v10  ;;  %v4777_v4 = vld [vmem:[%s6784_s25 + $0x3] ss:$0 sm:$0xff] }
 0xa36   :  { %v6396_v16 = vadd.f32 %v4749_v9, %v2317_v13 }
 0xa37   :  { %v6404_v21 = vadd.f32 %v4749_v9, %v2316_v14  ;;  %v4761_v9 = vld [vmem:[%s6785_s1 + $0x3] ss:$0 sm:$0xff] }
 0xa38   :  { %5331 = vmatmul.mubr.msk.f32.vlgmr.msra.gmra.mrb[28].mxu1 %vm82_vm0, %v6396_v16 }
 0xa39   :  { %5686 = vmatpush3.bf16.msra.mxu1 %v5685_v15  ;;  %5309 = vmatmul.mubr.msk.f32.vlgmr.msra.gmra.mrb[24].mxu0 %vm82_vm0, %v6404_v21 }
 0xa3a   :  { %5668 = vmatpush3.bf16.msra.mxu0 %v5667_v17  ;;  %5687 = vmatprep.subr.bf16.mxu1 %v5870_v19 }
 0xa3b   :  { %5669 = vmatprep.subr.bf16.mxu0 %v5870_v19  ;;  %5352 = vmatprep.mubr.msk.f32.mxu1 %vm5871_vm1, %v5872_v27 }
 0xa3c   :  { %5319 = vmatprep.mubr.msk.f32.mxu0 %vm5871_vm1, %v5872_v27 }
 0xa3d   :  { %5689 = vmatpush3.bf16.msra.mxu1 %v5688_v24 }
 0xa3e   :  { %5671 = vmatpush3.bf16.msra.mxu0 %v5670_v25  ;;  %5696 = vmatprep.subr.bf16.mxu1 %v5870_v19 }
 0xa3f   :  { %5678 = vmatprep.subr.bf16.mxu0 %v5870_v19 }
 0xa40   :  { %5353 = vmatmul.mubr.msk.f32.vlgmr.msra.gmra.mrb[30].mxu1 %vm82_vm0, %v6404_v21 }
 0xa41   :  { %5320 = vmatmul.mubr.msk.f32.vlgmr.msra.gmra.mrb[26].mxu0 %vm82_vm0, %v6404_v21  ;;  %5698 = vmatpush3.bf16.msra.mxu1 %v5685_v15 }
 0xa42   :  { %5680 = vmatpush3.bf16.msra.mxu0 %v5667_v17  ;;  %5699 = vmatprep.subr.bf16.mxu1 %v5870_v19 }
 0xa43   :  { %5681 = vmatprep.subr.bf16.mxu0 %v5870_v19  ;;  %5374 = vmatprep.mubr.msk.f32.mxu1 %vm5871_vm1, %v5872_v27 }
 0xa44   :  { %5341 = vmatprep.mubr.msk.f32.mxu0 %vm5871_vm1, %v5872_v27 }
 0xa45   :  { %5701 = vmatpush3.bf16.msra.mxu1 %v5688_v24 }
 0xa46   :  { %5683 = vmatpush3.bf16.msra.mxu0 %v5670_v25  ;;  %5708 = vmatprep.subr.bf16.mxu1 %v5870_v19 }
 0xa47   :  { %5690 = vmatprep.subr.bf16.mxu0 %v5870_v19 }
 0xa48   :  { %5375 = vmatmul.mubr.msk.f32.vlgmr.msra.gmra.mrb[32].mxu1 %vm82_vm0, %v6396_v16 }
 0xa49   :  { %5342 = vmatmul.mubr.msk.f32.vlgmr.msra.gmra.mrb[28].mxu0 %vm82_vm0, %v6396_v16  ;;  %5710 = vmatpush3.bf16.msra.mxu1 %v5709_v40 }
 0xa4a   :  { %5692 = vmatpush3.bf16.msra.mxu0 %v5691_v31  ;;  %5711 = vmatprep.subr.bf16.mxu1 %v5870_v19 }
 0xa4b   :  { %5693 = vmatprep.subr.bf16.mxu0 %v5870_v19  ;;  %5396 = vmatprep.mubr.msk.f32.mxu1 %vm5871_vm1, %v5872_v27 }
 0xa4c   :  { %5363 = vmatprep.mubr.msk.f32.mxu0 %vm5871_vm1, %v5872_v27 }
 0xa4d   :  { %5713 = vmatpush3.bf16.msra.mxu1 %v5712_v35 }
 0xa4e   :  { %5695 = vmatpush3.bf16.msra.mxu0 %v5694_v36  ;;  %5720 = vmatprep.subr.bf16.mxu1 %v5870_v19 }
 0xa4f   :  { %5702 = vmatprep.subr.bf16.mxu0 %v5870_v19 }
 0xa50   :  { %5397 = vmatmul.mubr.msk.f32.vlgmr.msra.gmra.mrb[34].mxu1 %vm82_vm0, %v6404_v21 }
 0xa51   :  { %5364 = vmatmul.mubr.msk.f32.vlgmr.msra.gmra.mrb[30].mxu0 %vm82_vm0, %v6404_v21  ;;  %5722 = vmatpush3.bf16.msra.mxu1 %v5709_v40 }
 0xa52   :  { %5704 = vmatpush3.bf16.msra.mxu0 %v5691_v31  ;;  %5723 = vmatprep.subr.bf16.mxu1 %v5870_v19 }
 0xa53   :  { %5705 = vmatprep.subr.bf16.mxu0 %v5870_v19  ;;  %5418 = vmatprep.mubr.msk.f32.mxu1 %vm5871_vm1, %v5872_v27 }
 0xa54   :  { %5385 = vmatprep.mubr.msk.f32.mxu0 %vm5871_vm1, %v5872_v27 }
 0xa55   :  { %5725 = vmatpush3.bf16.msra.mxu1 %v5712_v35 }
 0xa56   :  { %5707 = vmatpush3.bf16.msra.mxu0 %v5694_v36  ;;  %5432 = vmatprep.subr.mxu1 %v5872_v27 }
 0xa57   :  { %5714 = vmatprep.subr.bf16.mxu0 %v5870_v19 }
 0xa58   :  { %5419 = vmatmul.mubr.msk.f32.vlgmr.msra.gmra.mrb[36].mxu1 %vm82_vm0, %v6396_v16 }
 0xa59   :  { %5386 = vmatmul.mubr.msk.f32.vlgmr.msra.gmra.mrb[32].mxu0 %vm82_vm0, %v6396_v16  ;;  %5434 = vmatprep.mubr.msk.f32.mxu1 %vm5871_vm1, %v5872_v27 }
 0xa5a   :  { %5716 = vmatpush3.bf16.msra.mxu0 %v5715_v39  ;;  %5407 = vmatprep.mubr.msk.f32.mxu0 %vm5871_vm1, %v5872_v27 }
 0xa5b   :  { %5717 = vmatprep.subr.bf16.mxu0 %v5870_v19 }
 0xa5e   :  { %5719 = vmatpush3.bf16.msra.mxu0 %v5718_v43 }
 0xa5f   :  { %5726 = vmatprep.subr.bf16.mxu0 %v5870_v19 }
 0xa61   :  { %5408 = vmatmul.mubr.msk.f32.vlgmr.msra.gmra.mrb[34].mxu0 %vm82_vm0, %v6404_v21 }
 0xa62   :  { %5728 = vmatpush3.bf16.msra.mxu0 %v5715_v39  ;;  %5429 = vmatprep.mubr.msk.f32.mxu0 %vm5871_vm1, %v5872_v27 }
 0xa63   :  { %5729 = vmatprep.subr.bf16.mxu0 %v5870_v19 }
 0xa66   :  { %5731 = vmatpush3.bf16.msra.mxu0 %v5718_v43 }
 0xa67   :  { %5442 = vmatprep.subr.mxu0 %v5872_v27 }
 0xa69   :  { %5430 = vmatmul.mubr.msk.f32.vlgmr.msra.gmra.mrb[36].mxu0 %vm82_vm0, %v6396_v16 }
 0xa6a   :  { %5444 = vmatprep.mubr.msk.f32.mxu0 %vm5871_vm1, %v5872_v27 }
 0xb0b   :  { %v2562_v44 = vpop.f32.mrb[28].mxu1 }
 0xb0c   :  { %v2419_v45 = vpop.f32.mrb[24].mxu0  ;;  %v5332_v47 = vpop.f32.mrb[29].mxu1  ;;  %v2563_v2 = vadd.f32 %v4760_v52, %v2562_v44 }
 0xb0d   :  { %v5310_v48 = vpop.f32.mrb[25].mxu0  ;;  %v2420_v58 = vadd.f32 %v4760_v52, %v2419_v45 }
 0xb13   :  { %v2726_v49 = vpop.f32.mrb[30].mxu1 }
 0xb14   :  { %v2727_v53 = vadd.f32 %v4776_v46, %v2726_v49  ;;  %v2489_v54 = vpop.f32.mrb[26].mxu0  ;;  %v5354_v55 = vpop.f32.mrb[31].mxu1 }
 0xb15   :  { %v5321_v57 = vpop.f32.mrb[27].mxu0  ;;  %v2490_v12 = vadd.f32 %v4761_v9, %v2489_v54 }
 0xb16   :  { %5433 = vmatpush3.xpose.msk.msra.mxu1 %vm1042_vm2, %v2727_v53 }
 0xb17   :  { %5437 = vmatprep.subr.mxu1 %v5872_v27 }
 0xb19   :  { %5435 = vmatmul.mubr.msk.f32.vlgmr.msra.gmra.mrb[38].mxu1 %vm1042_vm2, %v2420_v58 }
 0xb1a   :  { %5439 = vmatprep.mubr.msk.f32.mxu1 %vm5871_vm1, %v5872_v27 }
 0xb1b   :  { %v2866_v59 = vpop.f32.mrb[32].mxu1 }
 0xb1c   :  { %v2867_v60 = vadd.f32 %v4776_v46, %v2866_v59  ;;  %v2632_v61 = vpop.f32.mrb[28].mxu0  ;;  %v5376_v62 = vpop.f32.mrb[33].mxu1 }
 0xb1d   :  { %v5343_v1 = vpop.f32.mrb[29].mxu0  ;;  %v2633_v22 = vadd.f32 %v4761_v9, %v2632_v61 }
 0xb1e   :  { %5443 = vmatpush3.xpose.msk.msra.mxu0 %vm1042_vm2, %v2867_v60 }
 0xb1f   :  { %5452 = vmatprep.subr.mxu0 %v5872_v27 }
 0xb21   :  { %5445 = vmatmul.mubr.msk.f32.vlgmr.msra.gmra.mrb[38].mxu0 %vm1042_vm2, %v2563_v2 }
 0xb22   :  { %5454 = vmatprep.mubr.msk.f32.mxu0 %vm5871_vm1, %v5872_v27 }
 0xb23   :  { %v3030_v5 = vpop.f32.mrb[34].mxu1 }
 0xb24   :  { %v3031_v6 = vadd.f32 %v4792_v3, %v3030_v5  ;;  %v2796_v7 = vpop.f32.mrb[30].mxu0  ;;  %v5398_v8 = vpop.f32.mrb[35].mxu1 }
 0xb25   :  { %v2797_v10 = vadd.f32 %v4777_v4, %v2796_v7  ;;  %v5365_v11 = vpop.f32.mrb[31].mxu0 }
 0xb26   :  { %5453 = vmatpush3.msra.mxu0 %v3031_v6  ;;  %v4810_v11 = vld [vmem:[%s6747_s10 + $0x20] sm:$0xff] }
 0xb27   :  { %5438 = vmatpush3.xpose.msk.msra.mxu1 %vm1042_vm2, %v2797_v10  ;;  %5462 = vmatprep.subr.mxu0 %v5872_v27 }
 0xb28   :  { %5447 = vmatprep.subr.mxu1 %v5872_v27 }
 0xb2a   :  { %5440 = vmatmul.mubr.msk.f32.vlgmr.msra.gmra.mrb[40].mxu1 %vm1042_vm2, %v2490_v12  ;;  %v4811_v12 = vld [vmem:[%s6747_s10 + $0x28] sm:$0xff] }
 0xb2b   :  { %v3170_v13 = vpop.f32.mrb[36].mxu1  ;;  %5449 = vmatprep.mubr.msk.f32.mxu1 %vm5871_vm1, %v5872_v27 }
 0xb2c   :  { %v6547_v14 = vadd.f32 %v4792_v3, %v3170_v13  ;;  %v2936_v15 = vpop.f32.mrb[32].mxu0  ;;  %v5420_v17 = vpop.f32.mrb[37].mxu1 }
 0xb2d   :  { %v2937_v18 = vadd.f32 %v4777_v4, %v2936_v15  ;;  %v5387_v20 = vpop.f32.mrb[33].mxu0  ;;  %v5733_v17 = vpack.c.bf16 %v4811_v12, %v4810_v11 }
 0xb2f   :  { %5448 = vmatpush3.xpose.msk.msra.mxu1 %vm1042_vm2, %v2937_v18 }
 0xb30   :  { %5457 = vmatprep.subr.mxu1 %v5872_v27 }
 0xb32   :  { %5450 = vmatmul.mubr.msk.f32.vlgmr.msra.gmra.mrb[42].mxu1 %vm1042_vm2, %v2633_v22 }
 0xb33   :  { %5459 = vmatprep.mubr.msk.f32.mxu1 %vm5871_vm1, %v5872_v27 }
 0xb34   :  { %v3100_v24 = vpop.f32.mrb[34].mxu0 }
 0xb35   :  { %v3101_v25 = vadd.f32 %v4793_v23, %v3100_v24  ;;  %v5409_v26 = vpop.f32.mrb[35].mxu0 }
 0xb36   :  { %v4813_v26 = vld [vmem:[%s6747_s10 + $0x38] sm:$0xff] }
 0xb37   :  { %5458 = vmatpush3.msra.mxu1 %v3101_v25  ;;  %v4812_v25 = vld [vmem:[%s6747_s10 + $0x30] sm:$0xff] }
 0xb38   :  { %5467 = vmatprep.subr.mxu1 %v5872_v27 }
 0xb3c   :  { %v3240_v28 = vpop.f32.mrb[36].mxu0 }
 0xb3d   :  { %v6558_v29 = vadd.f32 %v4793_v23, %v3240_v28  ;;  %v5431_v30 = vpop.f32.mrb[37].mxu0  ;;  %v5736_v28 = vpack.c.bf16 %v4813_v26, %v4812_v25 }
 0xbec   :  { %v3316_v40 = vpop.f32.mrb[38].mxu1 }
 0xbed   :  { %v3548_v31 = vmul.f32 0.25, %v3316_v40  ;;  %v5436_v50 = vpop.f32.mrb[39].mxu1 }
 0xbef   :  { %v3552_v32 = vadd.f32 %v6216_v51, %v3548_v31 }
 0xbf1   :  { %v3556_v33 = vsel %vm1379_vm3, %v3552_v32, -inf }
 0xbf2   :  { %3557 = vmax.xlane.f32.xlu0 %v3556_v33 }
 0xbf4   :  { %v3468_v34 = vpop.f32.mrb[38].mxu0 }
 0xbf5   :  { %v3550_v35 = vmul.f32 0.25, %v3468_v34  ;;  %v5446_v36 = vpop.f32.mrb[39].mxu0 }
 0xbf7   :  { %v3554_v37 = vadd.f32 %v6234_v0, %v3550_v35 }
 0xbf9   :  { %v3562_v38 = vsel %vm1379_vm3, %v3554_v37, -inf }
 0xbfa   :  { %3563 = vmax.xlane.f32.xlu0 %v3562_v38 }
 0xbfd   :  { %v3392_v39 = vpop.f32.mrb[40].mxu1 }
 0xbfe   :  { %v3549_v41 = vmul.f32 0.25, %v3392_v39  ;;  %v5441_v42 = vpop.f32.mrb[41].mxu1 }
 0xc00   :  { %v3553_v43 = vadd.f32 %v6222_v56, %v3549_v41 }
 0xc02   :  { %v3559_v44 = vsel %vm1379_vm3, %v3553_v43, -inf }
 0xc03   :  { %3560 = vmax.xlane.f32.xlu1 %v3559_v44 }
 0xc05   :  { %v3544_v51 = vpop.f32.mrb[42].mxu1 }
 0xc06   :  { %v3551_v45 = vmul.f32 0.25, %v3544_v51  ;;  %v5451_v47 = vpop.f32.mrb[43].mxu1 }
 0xc08   :  { %v3555_v48 = vadd.f32 %v6229_v63, %v3551_v45 }
 0xc0a   :  { %v3565_v46 = vsel %vm1379_vm3, %v3555_v48, -inf }
 0xc0b   :  { %3566 = vmax.xlane.f32.xlu1 %v3565_v46 }
 0xc7f   :  { %v3558_v0 = vpop.xlane.xlu0 %3557 }
 0xc80   :  { %v3568_v49 = vsub.f32 %v3552_v32, %v3558_v0 }
 0xc82   :  { %v3572_v52 = vmul.f32 1.442695, %v3568_v49 }
 0xc84   :  { %5816 = vpow2.f32 %v3572_v52 }
 0xc87   :  { %v3564_v53 = vpop.xlane.xlu0 %3563 }
 0xc88   :  { %v3570_v54 = vsub.f32 %v3554_v37, %v3564_v53 }
 0xc8a   :  { %v3576_v55 = vmul.f32 1.442695, %v3570_v54 }
 0xc8c   :  { %5818 = vpow2.f32 %v3576_v55 }
 0xc8e   :  { %v5817_v56 = vpop.eup %5816 }
 0xc8f   :  { %v3580_v57 = vsel %vm1379_vm3, %v5817_v56, 0.0 }
 0xc90   :  { %v3561_v58 = vpop.xlane.xlu1 %3560  ;;  %3581 = vadd.xlane.f32.xlu0 %v3580_v57 }
 0xc91   :  { %v3569_v59 = vsub.f32 %v3553_v43, %v3561_v58  ;;  %v4819_v43 = vld [vmem:[%s6748_s11 + $0x1] ss:$0 sm:$0xff] }
 0xc93   :  { %v3574_v60 = vmul.f32 1.442695, %v3569_v59 }
 0xc95   :  { %5820 = vpow2.f32 %v3574_v60 }
 0xc96   :  { %v5819_v63 = vpop.eup %5818 }
 0xc97   :  { %v3586_v61 = vsel %vm1379_vm3, %v5819_v63, 0.0 }
 0xc98   :  { %v3567_v62 = vpop.xlane.xlu1 %3566  ;;  %3587 = vadd.xlane.f32.xlu0 %v3586_v61 }
 0xc99   :  { %v3571_v1 = vsub.f32 %v3555_v48, %v3567_v62 }
 0xc9b   :  { %v3578_v2 = vmul.f32 1.442695, %v3571_v1 }
 0xc9d   :  { %5822 = vpow2.f32 %v3578_v2 }
 0xc9f   :  { %v5821_v3 = vpop.eup %5820 }
 0xca0   :  { %v3583_v4 = vsel %vm1379_vm3, %v5821_v3, 0.0 }
 0xca1   :  { %3584 = vadd.xlane.f32.xlu1 %v3583_v4 }
 0xca7   :  { %v5823_v5 = vpop.eup %5822 }
 0xca8   :  { %v3589_v6 = vsel %vm1379_vm3, %v5823_v5, 0.0 }
 0xca9   :  { %3590 = vadd.xlane.f32.xlu1 %v3589_v6  ;;  %v4827_v6 = vld [vmem:[%s6751_s14 + $0x38] sm:$0xff] }
 0xd1d   :  { %v3582_v7 = vpop.xlane.xlu0 %3581 }
 0xd1e   :  { %5824 = vrcp.f32 %v3582_v7 }
 0xd25   :  { %v3588_v8 = vpop.xlane.xlu0 %3587 }
 0xd26   :  { %5826 = vrcp.f32 %v3588_v8 }
 0xd28   :  { %v5825_v9 = vpop.eup %5824 }
 0xd29   :  { %v3596_v10 = vmul.f32 %v5825_v9, %v5817_v56 }
 0xd2b   :  { %5455 = vmatmul.mubr.msk.f32.vlgmr.msra.gmra.mrb[40].mxu0 %vm1379_vm3, %v3596_v10 }
 0xd2c   :  { %5463 = vmatpush3.msra.mxu0 %v6547_v14  ;;  %5464 = vmatprep.mubr.msk.f32.mxu0 %vm5871_vm1, %v5872_v27 }
 0xd2d   :  { %5732 = vmatprep.subr.bf16.mxu0 %v5870_v19 }
 0xd2e   :  { %v3585_v13 = vpop.xlane.xlu1 %3584 }
 0xd2f   :  { %5828 = vrcp.f32 %v3585_v13 }
 0xd30   :  { %v5827_v15 = vpop.eup %5826 }
 0xd31   :  { %v3598_v18 = vmul.f32 %v5827_v15, %v5819_v63 }
 0xd33   :  { %5465 = vmatmul.mubr.msk.f32.vlgmr.msra.gmra.mrb[42].mxu0 %vm1379_vm3, %v3598_v18 }
 0xd34   :  { %5734 = vmatpush3.bf16.msra.mxu0 %v5733_v17  ;;  %5476 = vmatprep.mubr.msk.f32.mxu0 %vm5871_vm1, %v5872_v27 }
 0xd35   :  { %5738 = vmatprep.subr.bf16.mxu0 %v5870_v19 }
 0xd36   :  { %v3591_v14 = vpop.xlane.xlu1 %3590 }
 0xd37   :  { %5830 = vrcp.f32 %v3591_v14  ;;  %v4823_v14 = vld [vmem:[%s6750_s13 + $0x1] ss:$0 sm:$0xff] }
 0xd39   :  { %v5829_v20 = vpop.eup %5828 }
 0xd3a   :  { %v3597_v22 = vmul.f32 %v5829_v20, %v5821_v3  ;;  %v4825_v3 = vld [vmem:[%s6751_s14 + $0x28] sm:$0xff] }
 0xd3c   :  { %5460 = vmatmul.mubr.msk.f32.vlgmr.msra.gmra.mrb[44].mxu1 %vm1379_vm3, %v3597_v22 }
 0xd3d   :  { %5468 = vmatpush3.msra.mxu1 %v6558_v29  ;;  %5469 = vmatprep.mubr.msk.f32.mxu1 %vm5871_vm1, %v5872_v27 }
 0xd3e   :  { %5735 = vmatprep.subr.bf16.mxu1 %v5870_v19 }
 0xd41   :  { %v5831_v23 = vpop.eup %5830 }
 0xd42   :  { %v3599_v24 = vmul.f32 %v5831_v23, %v5823_v5  ;;  %v4826_v5 = vld [vmem:[%s6751_s14 + $0x30] sm:$0xff] }
 0xd43   :  { %v5748_v7 = vpack.c.bf16 %v4827_v6, %v4826_v5 }
 0xd44   :  { %5470 = vmatmul.mubr.msk.f32.vlgmr.msra.gmra.mrb[46].mxu1 %vm1379_vm3, %v3599_v24 }
 0xd45   :  { %5483 = vmatprep.mubr.msk.f32.mxu1 %vm5871_vm1, %v5872_v27  ;;  %5737 = vmatpush3.bf16.msra.mxu1 %v5736_v28 }
 0xd46   :  { %5741 = vmatprep.subr.bf16.mxu1 %v5870_v19 }
 0xdfe   :  { %v3669_v29 = vpop.f32.mrb[40].mxu0 }
 0xdff   :  { %v5456_v30 = vpop.f32.mrb[41].mxu0  ;;  %5477 = vmatmul.mubr.msk.f32.vlgmr.msra.gmra.mrb[44].mxu0 %vm1042_vm2, %v3669_v29  ;;  %v4833_v29 = vld [vmem:[%s6753_s16 + $0x48] sm:$0xff] }
 0xe00   :  { %5740 = vmatpush3.bf16.msra.mxu0 %v5733_v17  ;;  %5490 = vmatprep.mubr.msk.f32.mxu0 %vm5871_vm1, %v5872_v27  ;;  %v4822_v17 = vld [vmem:[%s6749_s12 + $0x1] ss:$0 sm:$0xff] }
 0xe06   :  { %v3815_v40 = vpop.f32.mrb[42].mxu0 }
 0xe07   :  { %v5466_v31 = vpop.f32.mrb[43].mxu0  ;;  %5491 = vmatmul.mubr.msk.f32.vlgmr.msra.gmra.mrb[46].mxu0 %vm1042_vm2, %v3815_v40  ;;  %v4834_v40 = vld [vmem:[%s6753_s16 + $0x50] sm:$0xff] }
 0xe08   :  { %v4835_v31 = vld [vmem:[%s6753_s16 + $0x58] sm:$0xff] }
 0xe0f   :  { %v3742_v50 = vpop.f32.mrb[44].mxu1 }
 0xe10   :  { %v5461_v32 = vpop.f32.mrb[45].mxu1  ;;  %5484 = vmatmul.mubr.msk.f32.vlgmr.msra.gmra.mrb[48].mxu1 %vm1042_vm2, %v3742_v50  ;;  %v5756_v50 = vpack.c.bf16 %v4835_v31, %v4834_v40 }
 0xe11   :  { %5743 = vmatpush3.bf16.msra.mxu1 %v5736_v28  ;;  %5497 = vmatprep.mubr.msk.f32.mxu1 %vm5871_vm1, %v5872_v27  ;;  %v4832_v28 = vld [vmem:[%s6753_s16 + $0x40] sm:$0xff] }
 0xe12   :  { %v5752_v30 = vpack.c.bf16 %v4833_v29, %v4832_v28  ;;  %v4836_v32 = vld [vmem:[%s6753_s16 + $0x60] sm:$0xff] }
 0xe14   :  { %5753 = vmatprep.subr.bf16.mxu1 %v5752_v30 }
 0xe17   :  { %v3888_v33 = vpop.f32.mrb[46].mxu1 }
 0xe18   :  { %v5471_v34 = vpop.f32.mrb[47].mxu1  ;;  %5498 = vmatmul.mubr.msk.f32.vlgmr.msra.gmra.mrb[50].mxu1 %vm1042_vm2, %v3888_v33  ;;  %v4837_v33 = vld [vmem:[%s6753_s16 + $0x68] sm:$0xff] }
 0xe19   :  { %5755 = vmatpush3.bf16.msra.mxu1 %v5752_v30  ;;  %v5760_v34 = vpack.c.bf16 %v4837_v33, %v4836_v32 }
 0xe1a   :  { %5757 = vmatprep.subr.bf16.mxu1 %v5756_v50 }
 0xe1d   :  { %5759 = vmatpush3.bf16.msra.mxu1 %v5756_v50  ;;  %v4846_v50 = vld [vmem:[%s6755_s18 + $0x1] ss:$0 sm:$0xff] }
 0xe1e   :  { %5761 = vmatprep.subr.bf16.mxu1 %v5760_v34 }
 0xe21   :  { %5763 = vmatpush3.bf16.msra.mxu1 %v5760_v34 }
 0xed2   :  { %v3966_v35 = vpop.f32.mrb[44].mxu0 }
 0xed3   :  { %v5478_v36 = vpop.f32.mrb[45].mxu0  ;;  %v4189_v41 = vsel %vm82_vm0, %v3966_v35, 0.0  ;;  %v4838_v35 = vld [vmem:[%s6753_s16 + $0x70] sm:$0xff] }
 0xed4   :  { %v4839_v36 = vld [vmem:[%s6753_s16 + $0x78] sm:$0xff] }
 0xeda   :  { %v4112_v37 = vpop.f32.mrb[46].mxu0 }
 0xedb   :  { %v5492_v38 = vpop.f32.mrb[47].mxu0  ;;  %v4192_v0 = vsel %vm82_vm0, %v4112_v37, 0.0  ;;  %v5764_v37 = vpack.c.bf16 %v4839_v36, %v4838_v35  ;;  %v4847_v35 = vld [vmem:[%s6756_s19 + $0x1] ss:$0 sm:$0xff] }
 0xedc   :  { %v4829_v38 = vld [vmem:[%s6752_s15 + $0x1] ss:$0 sm:$0xff] }
 0xedd   :  { %5765 = vmatprep.subr.bf16.mxu1 %v5764_v37 }
 0xede   :  { %5767 = vmatpush3.bf16.msra.mxu1 %v5764_v37 }
 0xee3   :  { %v4039_v39 = vpop.f32.mrb[48].mxu1 }
 0xee4   :  { %v4190_v42 = vsel %vm82_vm0, %v4039_v39, 0.0  ;;  %v5485_v44 = vpop.f32.mrb[49].mxu1 }
 0xee5   :  { %v4191_v51 = vadd.f32 %v4190_v42, %v4189_v41 }
 0xee7   :  { %v4203_v45 = vadd.f32 %v4819_v43, %v4191_v51 }
 0xee9   :  { %v4205_v47 = vadd.f32 %v4203_v45, %v6404_v21 }
 0xeeb   :  { %v4185_v48 = vpop.f32.mrb[50].mxu1  ;;  %v4211_v46 = vsel %vm82_vm0, %v4205_v47, 0.0 }
 0xeec   :  { %v4193_v49 = vsel %vm82_vm0, %v4185_v48, 0.0  ;;  %v5499_v52 = vpop.f32.mrb[51].mxu1  ;;  %4212 = vadd.xlane.f32.xlu0 %v4211_v46 }
 0xeed   :  { %v4194_v53 = vadd.f32 %v4193_v49, %v4192_v0 }
 0xeef   :  { %v4204_v54 = vadd.f32 %v4819_v43, %v4194_v53 }
 0xef1   :  { %v4206_v55 = vadd.f32 %v4204_v54, %v6396_v16  ;;  %v4824_v16 = vld [vmem:[%s6751_s14 + $0x20] sm:$0xff] }
 0xef2   :  { %v5744_v4 = vpack.c.bf16 %v4825_v3, %v4824_v16 }
 0xef3   :  { %v4214_v56 = vsel %vm82_vm0, %v4206_v55, 0.0 }
 0xef4   :  { %4215 = vadd.xlane.f32.xlu1 %v4214_v56  ;;  %5745 = vmatprep.subr.bf16.mxu0 %v5744_v4 }
 0xef5   :  { %5747 = vmatpush3.bf16.msra.mxu0 %v5744_v4 }
 0xef6   :  { %5749 = vmatprep.subr.bf16.mxu0 %v5748_v7 }
 0xef9   :  { %5751 = vmatpush3.bf16.msra.mxu0 %v5748_v7 }
 0xefa   :  { %5768 = vmatprep.subr.bf16.mxu0 %v5870_v19 }
 0xf79   :  { %v4213_v57 = vpop.xlane.xlu0 %4212 }
 0xf7a   :  { %v4217_v58 = vmul.f32 0.03125, %v4213_v57 }
 0xf7c   :  { %v4219_v59 = vsub.f32 %v4205_v47, %v4217_v58 }
 0xf7e   :  { %v4221_v21 = vmul.f32 %v4219_v59, %v4219_v59 }
 0xf80   :  { %v4223_v60 = vsel %vm82_vm0, %v4221_v21, 0.0 }
 0xf81   :  { %4224 = vadd.xlane.f32.xlu0 %v4223_v60  ;;  %v4216_v63 = vpop.xlane.xlu1 %4215 }
 0xf82   :  { %v4218_v61 = vmul.f32 0.03125, %v4216_v63  ;;  %v4841_v63 = vld [vmem:[%s6754_s17 + $0x1] ss:$0 sm:$0xff] }
 0xf84   :  { %v4220_v62 = vsub.f32 %v4206_v55, %v4218_v61 }
 0xf86   :  { %v4222_v1 = vmul.f32 %v4220_v62, %v4220_v62 }
 0xf88   :  { %v4226_v2 = vsel %vm82_vm0, %v4222_v1, 0.0 }
 0xf89   :  { %4227 = vadd.xlane.f32.xlu1 %v4226_v2 }
0x100e   :  { %v4225_v8 = vpop.xlane.xlu0 %4224 }
0x100f   :  { %v4229_v9 = vmul.f32 0.03125, %v4225_v8 }
0x1011   :  { %v4231_v10 = vadd.f32 1e-12, %v4229_v9 }
0x1013   :  { %5832 = vrsqrt.f32 %v4231_v10 }
0x1016   :  { %v4228_v11 = vpop.xlane.xlu1 %4227 }
0x1017   :  { %v4230_v12 = vmul.f32 0.03125, %v4228_v11 }
0x1019   :  { %v4232_v13 = vadd.f32 1e-12, %v4230_v12 }
0x101b   :  { %5834 = vrsqrt.f32 %v4232_v13 }
0x101d   :  { %v5833_v15 = vpop.eup %5832 }
0x101e   :  { %v4235_v18 = vmul.f32 %v5833_v15, %v4219_v59 }
0x1020   :  { %v4243_v20 = vmul.f32 %v4822_v17, %v4235_v18  ;;  %v4511_v18 = vld [vmem:[%s6757_s20] sm:$0xff] }
0x1022   :  { %v4251_v22 = vadd.f32 %v4823_v14, %v4243_v20 }
0x1024   :  { %5508 = vmatprep.mubr.msk.f32.mxu0 %vm82_vm0, %v4251_v22 }
0x1025   :  { %v5835_v23 = vpop.eup %5834 }
0x1026   :  { %v4236_v24 = vmul.f32 %v5835_v23, %v4220_v62  ;;  %v4514_v23 = vld [vmem:[%s6757_s20 + $0x18] sm:$0xff] }
0x1028   :  { %v4244_v25 = vmul.f32 %v4822_v17, %v4236_v24 }
0x102a   :  { %v4252_v26 = vadd.f32 %v4823_v14, %v4244_v25  ;;  %v4512_v14 = vld [vmem:[%s6757_s20 + $0x8] sm:$0xff] }
0x102b   :  { %v5769_v20 = vpack.c.bf16 %v4512_v14, %v4511_v18 }
0x102c   :  { %5509 = vmatmul.mubr.msk.f32.vlgmr.msra.gmra.mrb[48].mxu0 %vm82_vm0, %v4252_v26 }
0x102d   :  { %5538 = vmatprep.mubr.msk.f32.mxu0 %vm5871_vm1, %v5872_v27  ;;  %5770 = vmatpush3.bf16.msra.mxu0 %v5769_v20 }
0x102e   :  { %5771 = vmatprep.subr.bf16.mxu0 %v5870_v19 }
0x10ff   :  { %v5510_v39 = vpop.f32.mrb[48].mxu0 }
0x1100   :  { %v4344_v41 = vadd.f32 %v5510_v39, %v4829_v38  ;;  %v4338_v42 = vpop.f32.mrb[49].mxu0 }
0x1101   :  { %v4339_v43 = vadd.f32 %v4829_v38, %v4338_v42 }
0x1102   :  { %v4350_v44 = vmul.f32 0.044715, %v4344_v41  ;;  %v4348_v59 = vmul.f32 0.5, %v4344_v41 }
0x1103   :  { %v4349_v51 = vmul.f32 0.044715, %v4339_v43  ;;  %v4347_v57 = vmul.f32 0.5, %v4339_v43 }
0x1104   :  { %v4352_v45 = vmul.f32 %v4350_v44, %v4344_v41  ;;  %v4601_v44 = vld [vmem:[%s6759_s22 + $0x8] sm:$0xff] }
0x1105   :  { %v4351_v47 = vmul.f32 %v4349_v51, %v4339_v43  ;;  %v4602_v51 = vld [vmem:[%s6759_s22 + $0x10] sm:$0xff] }
0x1106   :  { %v4354_v48 = vmul.f32 %v4352_v45, %v4344_v41 }
0x1107   :  { %v4353_v46 = vmul.f32 %v4351_v47, %v4339_v43  ;;  %v4603_v47 = vld [vmem:[%s6759_s22 + $0x18] sm:$0xff] }
0x1108   :  { %v4356_v0 = vadd.f32 %v4354_v48, %v4344_v41  ;;  %v5778_v48 = vpack.c.bf16 %v4603_v47, %v4602_v51 }
0x1109   :  { %v4355_v49 = vadd.f32 %v4353_v46, %v4339_v43  ;;  %v4600_v43 = vld [vmem:[%s6759_s22] sm:$0xff]  ;;  %s5873_s22 = smov [#allocation2]  }
0x110a   :  { %v4358_v52 = vmul.f32 0.7978846, %v4356_v0  ;;  %v5775_v45 = vpack.c.bf16 %v4601_v44, %v4600_v43  ;;  %s4691_s9 = sshll.u32 %s5873_s22, 4  ;;  %s4692_s9 = int_to_ptr.vmem [resolvable:$true] %s4691_s9 }
0x110b   :  { %v4357_v53 = vmul.f32 0.7978846, %v4355_v49  ;;  %s5846_s15 = scalar_lea.vmem %s4692_s9, 32  ;;  %p5851_p1 = scmp.lt.s32.totalorder %s4692_s9, %s4692_s9 }
0x110c   :  { %5836 = vtanh.f32 %v4358_v52  ;;  %p5847_p0 = scmp.ne.s32.totalorder %s4692_s9, %s5846_s15  ;;  %p5852_p2 = scmp.lt.s32.totalorder %s5846_s15, %s5846_s15 }
0x110d   :  { %5838 = vtanh.f32 %v4357_v53  ;;  %v4850_v53 = vld [vmem:[%s6760_s23] ss:$0 sm:$0xff] }
0x110e   :  { %p5853_p3 = por %p5852_p2, %p5851_p1 }
0x1110   :  { %p5854_p4 = pnand %p5853_p3, %p5847_p0 }
0x1116   :  { %v5837_v54 = vpop.eup %5836 }
0x1117   :  { %v5839_v55 = vpop.eup %5838  ;;  %v4362_v56 = vadd.f32 1.0, %v5837_v54 }
0x1118   :  { %v4361_v58 = vadd.f32 1.0, %v5839_v55 }
0x1119   :  { %v4364_v60 = vmul.f32 %v4362_v56, %v4348_v59 }
0x111a   :  { %v4363_v21 = vmul.f32 %v4361_v58, %v4347_v57 }
0x111c   :  { %5527 = vmatprep.mubr.msk.f32.mxu1 %vm2198_vm4, %v4363_v21 }
0x111d   :  { %5528 = vmatmul.mubr.msk.f32.vlgmr.msra.gmra.mrb[52].mxu1 %vm2198_vm4, %v4364_v60 }
0x11f0   :  { %v5529_v61 = vpop.f32.mrb[52].mxu1 }
0x11f1   :  { %v4460_v62 = vadd.f32 %v5529_v61, %v4841_v63  ;;  %v4454_v1 = vpop.f32.mrb[53].mxu1 }
0x11f2   :  { %v4455_v2 = vadd.f32 %v4841_v63, %v4454_v1 }
0x11f3   :  { %v4464_v16 = vadd.f32 %v4460_v62, %v4252_v26 }
0x11f4   :  { %v4463_v3 = vadd.f32 %v4455_v2, %v4251_v22  ;;  %v4513_v22 = vld [vmem:[%s6757_s20 + $0x10] sm:$0xff] }
0x11f5   :  { %v4472_v4 = vsel %vm82_vm0, %v4464_v16, 0.0  ;;  %v5772_v24 = vpack.c.bf16 %v4514_v23, %v4513_v22 }
0x11f6   :  { %4473 = vadd.xlane.f32.xlu0 %v4472_v4  ;;  %v4469_v5 = vsel %vm82_vm0, %v4463_v3, 0.0 }
0x11f7   :  { %4470 = vadd.xlane.f32.xlu1 %v4469_v5  ;;  %5773 = vmatpush3.bf16.msra.mxu0 %v5772_v24 }
0x11f8   :  { %5774 = vmatprep.subr.bf16.mxu0 %v5870_v19 }
0x1283   :  { %v4474_v6 = vpop.xlane.xlu0 %4473 }
0x1284   :  { %v4476_v7 = vmul.f32 0.03125, %v4474_v6  ;;  %v4471_v8 = vpop.xlane.xlu1 %4470 }
0x1285   :  { %v4475_v9 = vmul.f32 0.03125, %v4471_v8 }
0x1286   :  { %v4478_v10 = vsub.f32 %v4464_v16, %v4476_v7 }
0x1287   :  { %v4477_v11 = vsub.f32 %v4463_v3, %v4475_v9 }
0x1288   :  { %v4480_v12 = vmul.f32 %v4478_v10, %v4478_v10 }
0x1289   :  { %v4479_v13 = vmul.f32 %v4477_v11, %v4477_v11 }
0x128a   :  { %v4484_v15 = vsel %vm82_vm0, %v4480_v12, 0.0 }
0x128b   :  { %4485 = vadd.xlane.f32.xlu0 %v4484_v15  ;;  %v4481_v17 = vsel %vm82_vm0, %v4479_v13, 0.0 }
0x128c   :  { %4482 = vadd.xlane.f32.xlu1 %v4481_v17 }
0x1318   :  { %v4486_v25 = vpop.xlane.xlu0 %4485 }
0x1319   :  { %v4488_v26 = vmul.f32 0.03125, %v4486_v25  ;;  %v4483_v28 = vpop.xlane.xlu1 %4482 }
0x131a   :  { %v4487_v29 = vmul.f32 0.03125, %v4483_v28 }
0x131b   :  { %v4490_v30 = vadd.f32 1e-12, %v4488_v26 }
0x131c   :  { %v4489_v40 = vadd.f32 1e-12, %v4487_v29 }
0x131d   :  { %5840 = vrsqrt.f32 %v4490_v30 }
0x131e   :  { %5842 = vrsqrt.f32 %v4489_v40 }
0x1327   :  { %v5841_v31 = vpop.eup %5840 }
0x1328   :  { %v5843_v32 = vpop.eup %5842  ;;  %v4494_v33 = vmul.f32 %v5841_v31, %v4478_v10 }
0x1329   :  { %v4493_v34 = vmul.f32 %v5843_v32, %v4477_v11 }
0x132a   :  { %v4502_v36 = vmul.f32 %v4846_v50, %v4494_v33 }
0x132b   :  { %v4501_v37 = vmul.f32 %v4846_v50, %v4493_v34 }
0x132c   :  { %v4510_v38 = vadd.f32 %v4847_v35, %v4502_v36 }
0x132d   :  { %v4509_v39 = vadd.f32 %v4847_v35, %v4501_v37 }
0x132e   :  { %v4524_v41 = vrot.slane %v4510_v38, 7 }
0x1330   :  { %v4526_v42 = vsel %vm4525_vm5, %v4524_v41, %v4509_v39 }
0x1331   :  { %5539 = vmatmul.mubr.msk.f32.vlgmr.msra.gmra.mrb[50].mxu0 %vm82_vm0, %v4526_v42 }
0x1332   :  { %5549 = vmatprep.mubr.msk.f32.mxu0 %vm5871_vm1, %v5872_v27  ;;  %5776 = vmatpush3.bf16.msra.mxu0 %v5775_v45  ;;  %v4848_v27 = vld [vmem:[%s6758_s21] ss:$0 sm:$0xff] }
0x1333   :  { %5777 = vmatprep.subr.bf16.mxu0 %v5870_v19 }
0x1336   :  { %5779 = vmatpush3.bf16.msra.mxu0 %v5778_v48 }
0x1404   :  { %v4595_v46 = vpop.f32.mrb[50].mxu0 }
0x1405   :  { %v4596_v0 = vadd.f32 %v4848_v27, %v4595_v46  ;;  %v5540_v49 = vpop.f32.mrb[51].mxu0 }
0x1407   :  { %5844 = vtanh.f32 %v4596_v0 }
0x1411   :  { %v5845_v52 = vpop.eup %5844 }
0x1412   :  { %5550 = vmatmul.mubr.msk.f32.vlgmr.msra.gmra.mrb[52].mxu0 %vm82_vm0, %v5845_v52 }
0x14e5   :  { %v4680_v54 = vpop.f32.mrb[52].mxu0 }
0x14e6   :  { %v4681_v19 = vadd.f32 %v4850_v53, %v4680_v54  ;;  %v5551_v55 = vpop.f32.mrb[53].mxu0 }
0x14e8   :  { %4684 = vst [vmem:[#allocation2] sm:$0x3] %v4681_v19 }
0x14e9   :  { %5857 = shalt.err (!%p5854_p4)
}
0x14ea   :  { %s5858_s17 = scalar_lea.hbm %s6761_s24, 32 }
0x14eb   :  { %p5859_p5 = scmp.ne.s32.totalorder %s6761_s24, %s5858_s17  ;;  %p5862_p6 = scmp.lt.u32.totalorder %s5858_s17, %s6761_s24 }
0x14ed   :  { %p5864_p7 = pnand %p5862_p6, %p5859_p5 }
0x14ef   :  { %5867 = shalt.err (!%p5864_p7)
}
0x14f0   :  { %4694 = dma.vmem_to_hbm [thread:$0]  %s4692_s9, 32, %s6761_s24, [#allocation3]  }
0x14f1   :  { %5868 = dma.done.wait [#allocation3], 32  }
0x14f2   :  { %5869 = vsyncadd [#allocation3], 4294967264 }
0x14f3   :  { %4698 = vsyncpa [#allocation3], 1 }

</bundles_post_ra>
